<compile_context>
chip_gen: v6e
topology: v6e:2x2x1
jax: 0.10.0
libtpu: 0.0.40
codegen_flags: <defaults>
</compile_context>

<pallas_src>
import functools

import jax
import jax.numpy as jnp
from jax import lax
from jax.experimental import pallas as pl
from jax.experimental.pallas import tpu as pltpu


# ----------------------------- Pallas GRU kernel -----------------------------
def gru_embed_kernel(ids_ref, gtab_ref, whr_ref, whz_ref, whn_ref, bhn_ref, o_ref):
    """Fused embedding+projection lookup + full GRU recurrence for one batch tile.

    ids_ref  : (L, TB, 1) int32   time-major pinyin ids for this batch tile
    gtab_ref : (NE, 3H)           fused table: emb @ W_ih^T + folded input biases
                                  gate order [r | z | n]
    whr_ref  : (H, H)             hidden->hidden weights, r gate (transposed)
    whz_ref  : (H, H)             hidden->hidden weights, z gate (transposed)
    whn_ref  : (H, H)             hidden->hidden weights, n gate (transposed)
    bhn_ref  : (1, H)             b_hn (must stay inside r * (.))
    o_ref    : (TB, H)            final hidden state h_L for this batch tile
    """
    L, TB, _ = ids_ref.shape
    NE = gtab_ref.shape[0]
    H = o_ref.shape[1]

    # ---- one fused MXU matmul: one-hot(ids) @ (emb @ W_ih^T + biases) ----------
    ids = ids_ref[...]                                              # (L, TB, 1) int32
    iota = lax.broadcasted_iota(jnp.int32, (L, TB, NE), 2)
    onehot = jnp.where(iota == ids, 1.0, 0.0).astype(jnp.float32)   # (L, TB, NE)
    onehot2 = onehot.reshape(L * TB, NE)                            # leading-dim merge (TB % 8 == 0)
    gx = jnp.dot(onehot2, gtab_ref[...],
                 preferred_element_type=jnp.float32)                # (L*TB, 3H), biases included

    gx_r = gx[:, 0:H]            # one-time lane-offset slices, off the serial path
    gx_z = gx[:, H:2 * H]
    gx_n = gx[:, 2 * H:3 * H]

    whr = whr_ref[...]
    whz = whz_ref[...]
    whn = whn_ref[...]
    bhn = jnp.broadcast_to(bhn_ref[...], (TB, H))    # hoist broadcast out of the loop

    # ---- serial recurrence, statically unrolled over L ------------------------
    h = jnp.zeros((TB, H), jnp.float32)
    for t in range(L):                               # L is static; full unroll
        lo = t * TB                                  # static, sublane-aligned row slice
        gh_r = jnp.dot(h, whr, preferred_element_type=jnp.float32)
        gh_z = jnp.dot(h, whz, preferred_element_type=jnp.float32)
        gh_n = jnp.dot(h, whn, preferred_element_type=jnp.float32)
        r = jax.nn.sigmoid(gx_r[lo:lo + TB, :] + gh_r)
        z = jax.nn.sigmoid(gx_z[lo:lo + TB, :] + gh_z)
        n = jnp.tanh(gx_n[lo:lo + TB, :] + r * (gh_n + bhn))
        h = n + z * (h - n)                          # == (1-z)*n + z*h

    o_ref[...] = h


def _round_up(x, m):
    return (x + m - 1) // m * m


def gru_embed_forward(ids_bl, pyemb, w_ih, w_hh, b_ih, b_hh):
    """ids_bl: (B, L) int32.  Returns final GRU hidden state (B, H) float32."""
    B, L = ids_bl.shape
    NE, D = pyemb.shape
    H = w_hh.shape[1]

    # Whole (padded) batch in one grid step when small; otherwise 128-row tiles.
    B_pad = _round_up(B, 8)
    tile_b = B_pad if B_pad <= 128 else 128
    B_pad = _round_up(B_pad, tile_b)

    # Time-major ids (L, B_pad, 1): tiny int32 reorder in the wrapper instead of
    # transposing any f32 activation; timesteps index the leading axis.
    ids_tm = jnp.transpose(ids_bl.astype(jnp.int32))[:, :, None]    # (L, B, 1)
    if B_pad != B:
        ids_tm = jnp.pad(ids_tm, ((0, 0), (0, B_pad - B), (0, 0)))

    # PyTorch GRU parameter layout: w_ih (3H, D), w_hh (3H, H), gate order [r,z,n].
    # Fuse embedding table, input->hidden weights and all input-side biases into a
    # single (NE, 3H) table; exact under one-hot row selection:
    #   gtab[e] = emb[e] @ W_ih^T + [b_ir + b_hr | b_iz + b_hz | b_in]
    bx = jnp.concatenate([b_ih[:2 * H] + b_hh[:2 * H], b_ih[2 * H:]]).astype(jnp.float32)
    gtab = pyemb.astype(jnp.float32) @ w_ih.T.astype(jnp.float32) + bx[None, :]   # (NE, 3H)

    whr = w_hh[0:H].T.astype(jnp.float32)                           # (H, H)
    whz = w_hh[H:2 * H].T.astype(jnp.float32)
    whn = w_hh[2 * H:3 * H].T.astype(jnp.float32)
    bhn = b_hh[2 * H:3 * H].reshape(1, H).astype(jnp.float32)       # stays inside r*(.)

    grid = (B_pad // tile_b,)
    h_final = pl.pallas_call(
        gru_embed_kernel,
        out_shape=jax.ShapeDtypeStruct((B_pad, H), jnp.float32),
        grid_spec=pltpu.PrefetchScalarGridSpec(
            num_scalar_prefetch=0,
            grid=grid,
            in_specs=[
                pl.BlockSpec((L, tile_b, 1), lambda i: (0, i, 0)),      # ids (time-major)
                pl.BlockSpec((NE, 3 * H), lambda i: (0, 0)),            # fused emb@W_ih^T + biases
                pl.BlockSpec((H, H), lambda i: (0, 0)),                 # W_hr^T
                pl.BlockSpec((H, H), lambda i: (0, 0)),                 # W_hz^T
                pl.BlockSpec((H, H), lambda i: (0, 0)),                 # W_hn^T
                pl.BlockSpec((1, H), lambda i: (0, 0)),                 # b_hn
            ],
            out_specs=pl.BlockSpec((tile_b, H), lambda i: (i, 0)),
        ),
        compiler_params=pltpu.CompilerParams(
            dimension_semantics=("parallel",)),
    )(ids_tm, gtab, whr, whz, whn, bhn)

    return h_final[:B]


# ------------------------- EmbeddingNetwork wrapper --------------------------
class Config:
    hidden_size = 32
    hidden_dropout_prob = 0.1  # no effect: 1-layer GRU + inference path


def init_params(key, num_embeddings, pydim, hidden):
    k0, k1, k2, k3, k4 = jax.random.split(key, 5)
    scale = 1.0 / jnp.sqrt(hidden)
    return {
        "pyemb": jax.random.normal(k0, (num_embeddings, pydim), jnp.float32),
        # PyTorch GRU param shapes, gate order [r, z, n]:
        "w_ih": jax.random.uniform(k1, (3 * hidden, pydim), jnp.float32, -scale, scale),
        "w_hh": jax.random.uniform(k2, (3 * hidden, hidden), jnp.float32, -scale, scale),
        "b_ih": jax.random.uniform(k3, (3 * hidden,), jnp.float32, -scale, scale),
        "b_hh": jax.random.uniform(k4, (3 * hidden,), jnp.float32, -scale, scale),
    }


@functools.partial(jax.jit, static_argnames=("max_sen_len", "seq_len", "hidden"))
def embedding_network_forward(params, sen_pyids, *, max_sen_len, seq_len, hidden):
    ids = sen_pyids.reshape(-1, seq_len)                              # (B, L)
    h_final = gru_embed_forward(ids, params["pyemb"], params["w_ih"], params["w_hh"],
                                params["b_ih"], params["b_hh"])       # (B, H)
    # torch: final_out is (1, B, H); .mean(0, keepdim=True) is identity for 1 layer.
    return h_final.reshape(-1, max_sen_len, hidden)


# ------------------------------- reference -----------------------------------
def gru_reference(params, sen_pyids, *, max_sen_len, seq_len, hidden):
    ids = sen_pyids.reshape(-1, seq_len)
    x = params["pyemb"][ids]                                          # (B, L, D)
    w_ih, w_hh = params["w_ih"], params["w_hh"]
    b_ih, b_hh = params["b_ih"], params["b_hh"]
    H = hidden

    def cell(h, x_t):
        gx = x_t @ w_ih.T + b_ih
        gh = h @ w_hh.T + b_hh
        r = jax.nn.sigmoid(gx[:, :H] + gh[:, :H])
        z = jax.nn.sigmoid(gx[:, H:2 * H] + gh[:, H:2 * H])
        n = jnp.tanh(gx[:, 2 * H:] + r * gh[:, 2 * H:])
        h_new = (1.0 - z) * n + z * h
        return h_new, None

    h0 = jnp.zeros((x.shape[0], H), jnp.float32)
    h_final, _ = lax.scan(cell, h0, jnp.transpose(x, (1, 0, 2)))
    return h_final.reshape(-1, max_sen_len, hidden)


# ---------------------------------- main --------------------------------------
if __name__ == "__main__":
    config = Config()
    PYLEN = 8              # pinyin sequence length per token
    PYDIM = 32
    HIDDEN = config.hidden_size
    NUM_EMBEDDINGS = 50
    MAX_SEN_LEN = 8
    BATCH = 2

    key = jax.random.PRNGKey(0)
    pkey, ikey = jax.random.split(key)
    params = init_params(pkey, NUM_EMBEDDINGS, PYDIM, HIDDEN)

    # sen_pyids: (batch, max_sen_len, PYLEN) int32 pinyin ids
    sen_pyids = jax.random.randint(ikey, (BATCH, MAX_SEN_LEN, PYLEN), 0, NUM_EMBEDDINGS, jnp.int32)

    out = embedding_network_forward(params, sen_pyids,
                                    max_sen_len=MAX_SEN_LEN, seq_len=PYLEN,
                                    hidden=HIDDEN)
    out = jax.block_until_ready(out)

    ref = gru_reference(params, sen_pyids,
                        max_sen_len=MAX_SEN_LEN, seq_len=PYLEN, hidden=HIDDEN)

    assert out.shape == (BATCH, MAX_SEN_LEN, HIDDEN), out.shape
    assert jnp.allclose(out, ref, atol=2e-5, rtol=1e-5), float(jnp.max(jnp.abs(out - ref)))

    print("KERNEL_OK")
</pallas_src>

<mosaic_0001>
module attributes {stable_mosaic.version = 11 : i64} {
  func.func @gru_embed_kernel(%arg0: i32, %arg1: memref<8x16x1xi32, #tpu.memory_space<vmem>>, %arg2: memref<50x96xf32, #tpu.memory_space<vmem>>, %arg3: memref<32x32xf32, #tpu.memory_space<vmem>>, %arg4: memref<32x32xf32, #tpu.memory_space<vmem>>, %arg5: memref<32x32xf32, #tpu.memory_space<vmem>>, %arg6: memref<1x32xf32, #tpu.memory_space<vmem>>, %arg7: memref<16x32xf32, #tpu.memory_space<vmem>>) attributes {dimension_semantics = [#tpu.dimension_semantics<parallel>], iteration_bounds = array<i64: 1>, scalar_prefetch = 0 : i64, scratch_operands = 0 : i64, tpu.core_type = #tpu.core_type<tc>, window_params = [{transform_indices = @transform_0, window_bounds = array<i64: 8, 16, 1>}, {pipeline_mode = #tpu.pipeline_mode<synchronous>, transform_indices = @transform_1, window_bounds = array<i64: 50, 96>}, {pipeline_mode = #tpu.pipeline_mode<synchronous>, transform_indices = @transform_2, window_bounds = array<i64: 32, 32>}, {pipeline_mode = #tpu.pipeline_mode<synchronous>, transform_indices = @transform_3, window_bounds = array<i64: 32, 32>}, {pipeline_mode = #tpu.pipeline_mode<synchronous>, transform_indices = @transform_4, window_bounds = array<i64: 32, 32>}, {pipeline_mode = #tpu.pipeline_mode<synchronous>, transform_indices = @transform_5, window_bounds = array<i64: 1, 32>}, {transform_indices = @transform_6, window_bounds = array<i64: 16, 32>}]} {
    %c0 = arith.constant 0 : index
    %c0_0 = arith.constant 0 : index
    %c0_1 = arith.constant 0 : index
    %0 = vector.load %arg1[%c0, %c0_0, %c0_1] : memref<8x16x1xi32, #tpu.memory_space<vmem>>, vector<8x16x1xi32>
    %1 = tpu.iota {dimensions = array<i32: 2>} : vector<8x16x50xi32>
    %2 = vector.broadcast %0 : vector<8x16x1xi32> to vector<8x16x50xi32>
    %3 = arith.cmpi eq, %1, %2 : vector<8x16x50xi32>
    %cst = arith.constant 1.000000e+00 : f32
    %cst_2 = arith.constant 0.000000e+00 : f32
    %4 = vector.broadcast %cst : f32 to vector<8x16x50xf32>
    %5 = vector.broadcast %cst_2 : f32 to vector<8x16x50xf32>
    %6 = arith.select %3, %4, %5 : vector<8x16x50xi1>, vector<8x16x50xf32>
    %7 = vector.shape_cast %6 : vector<8x16x50xf32> to vector<128x50xf32>
    %c0_3 = arith.constant 0 : index
    %c0_4 = arith.constant 0 : index
    %8 = vector.load %arg2[%c0_3, %c0_4] : memref<50x96xf32, #tpu.memory_space<vmem>>, vector<50x96xf32>
    %cst_5 = arith.constant dense<0.000000e+00> : vector<128x96xf32>
    %9 = tpu.matmul %7, %8, %cst_5 {dimension_numbers = #tpu.dot_dimension_numbers<[1], [0], [0], [1], [0, 0, 1, 1], [], []>} : vector<128x50xf32>, vector<50x96xf32>, vector<128x96xf32> -> vector<128x96xf32>
    %10 = vector.extract_strided_slice %9 {offsets = [0, 0], sizes = [128, 32], strides = [1, 1]} : vector<128x96xf32> to vector<128x32xf32>
    %11 = vector.extract_strided_slice %9 {offsets = [0, 32], sizes = [128, 32], strides = [1, 1]} : vector<128x96xf32> to vector<128x32xf32>
    %12 = vector.extract_strided_slice %9 {offsets = [0, 64], sizes = [128, 32], strides = [1, 1]} : vector<128x96xf32> to vector<128x32xf32>
    %c0_6 = arith.constant 0 : index
    %c0_7 = arith.constant 0 : index
    %13 = vector.load %arg3[%c0_6, %c0_7] : memref<32x32xf32, #tpu.memory_space<vmem>>, vector<32x32xf32>
    %c0_8 = arith.constant 0 : index
    %c0_9 = arith.constant 0 : index
    %14 = vector.load %arg4[%c0_8, %c0_9] : memref<32x32xf32, #tpu.memory_space<vmem>>, vector<32x32xf32>
    %c0_10 = arith.constant 0 : index
    %c0_11 = arith.constant 0 : index
    %15 = vector.load %arg5[%c0_10, %c0_11] : memref<32x32xf32, #tpu.memory_space<vmem>>, vector<32x32xf32>
    %c0_12 = arith.constant 0 : index
    %c0_13 = arith.constant 0 : index
    %16 = vector.load %arg6[%c0_12, %c0_13] : memref<1x32xf32, #tpu.memory_space<vmem>>, vector<1x32xf32>
    %17 = vector.shape_cast %16 : vector<1x32xf32> to vector<1x32xf32>
    %18 = vector.broadcast %17 : vector<1x32xf32> to vector<16x32xf32>
    %cst_14 = arith.constant 0.000000e+00 : f32
    %19 = vector.broadcast %cst_14 : f32 to vector<16x32xf32>
    %cst_15 = arith.constant dense<0.000000e+00> : vector<16x32xf32>
    %20 = tpu.matmul %19, %13, %cst_15 {dimension_numbers = #tpu.dot_dimension_numbers<[1], [0], [0], [1], [0, 0, 1, 1], [], []>} : vector<16x32xf32>, vector<32x32xf32>, vector<16x32xf32> -> vector<16x32xf32>
    %cst_16 = arith.constant dense<0.000000e+00> : vector<16x32xf32>
    %21 = tpu.matmul %19, %14, %cst_16 {dimension_numbers = #tpu.dot_dimension_numbers<[1], [0], [0], [1], [0, 0, 1, 1], [], []>} : vector<16x32xf32>, vector<32x32xf32>, vector<16x32xf32> -> vector<16x32xf32>
    %cst_17 = arith.constant dense<0.000000e+00> : vector<16x32xf32>
    %22 = tpu.matmul %19, %15, %cst_17 {dimension_numbers = #tpu.dot_dimension_numbers<[1], [0], [0], [1], [0, 0, 1, 1], [], []>} : vector<16x32xf32>, vector<32x32xf32>, vector<16x32xf32> -> vector<16x32xf32>
    %23 = vector.extract_strided_slice %10 {offsets = [0, 0], sizes = [16, 32], strides = [1, 1]} : vector<128x32xf32> to vector<16x32xf32>
    %24 = arith.addf %23, %20 : vector<16x32xf32>
    %25 = arith.negf %24 : vector<16x32xf32>
    %26 = math.exp %25 : vector<16x32xf32>
    %cst_18 = arith.constant 1.000000e+00 : f32
    %27 = vector.broadcast %cst_18 : f32 to vector<16x32xf32>
    %28 = arith.addf %27, %26 : vector<16x32xf32>
    %29 = arith.divf %27, %28 : vector<16x32xf32>
    %30 = vector.extract_strided_slice %11 {offsets = [0, 0], sizes = [16, 32], strides = [1, 1]} : vector<128x32xf32> to vector<16x32xf32>
    %31 = arith.addf %30, %21 : vector<16x32xf32>
    %32 = arith.negf %31 : vector<16x32xf32>
    %33 = math.exp %32 : vector<16x32xf32>
    %cst_19 = arith.constant 1.000000e+00 : f32
    %34 = vector.broadcast %cst_19 : f32 to vector<16x32xf32>
    %35 = arith.addf %34, %33 : vector<16x32xf32>
    %36 = arith.divf %34, %35 : vector<16x32xf32>
    %37 = vector.extract_strided_slice %12 {offsets = [0, 0], sizes = [16, 32], strides = [1, 1]} : vector<128x32xf32> to vector<16x32xf32>
    %38 = arith.addf %22, %18 : vector<16x32xf32>
    %39 = arith.mulf %29, %38 : vector<16x32xf32>
    %40 = arith.addf %37, %39 : vector<16x32xf32>
    %41 = math.tanh %40 : vector<16x32xf32>
    %42 = arith.subf %19, %41 : vector<16x32xf32>
    %43 = arith.mulf %36, %42 : vector<16x32xf32>
    %44 = arith.addf %41, %43 : vector<16x32xf32>
    %cst_20 = arith.constant dense<0.000000e+00> : vector<16x32xf32>
    %45 = tpu.matmul %44, %13, %cst_20 {dimension_numbers = #tpu.dot_dimension_numbers<[1], [0], [0], [1], [0, 0, 1, 1], [], []>} : vector<16x32xf32>, vector<32x32xf32>, vector<16x32xf32> -> vector<16x32xf32>
    %cst_21 = arith.constant dense<0.000000e+00> : vector<16x32xf32>
    %46 = tpu.matmul %44, %14, %cst_21 {dimension_numbers = #tpu.dot_dimension_numbers<[1], [0], [0], [1], [0, 0, 1, 1], [], []>} : vector<16x32xf32>, vector<32x32xf32>, vector<16x32xf32> -> vector<16x32xf32>
    %cst_22 = arith.constant dense<0.000000e+00> : vector<16x32xf32>
    %47 = tpu.matmul %44, %15, %cst_22 {dimension_numbers = #tpu.dot_dimension_numbers<[1], [0], [0], [1], [0, 0, 1, 1], [], []>} : vector<16x32xf32>, vector<32x32xf32>, vector<16x32xf32> -> vector<16x32xf32>
    %48 = vector.extract_strided_slice %10 {offsets = [16, 0], sizes = [16, 32], strides = [1, 1]} : vector<128x32xf32> to vector<16x32xf32>
    %49 = arith.addf %48, %45 : vector<16x32xf32>
    %50 = arith.negf %49 : vector<16x32xf32>
    %51 = math.exp %50 : vector<16x32xf32>
    %cst_23 = arith.constant 1.000000e+00 : f32
    %52 = vector.broadcast %cst_23 : f32 to vector<16x32xf32>
    %53 = arith.addf %52, %51 : vector<16x32xf32>
    %54 = arith.divf %52, %53 : vector<16x32xf32>
    %55 = vector.extract_strided_slice %11 {offsets = [16, 0], sizes = [16, 32], strides = [1, 1]} : vector<128x32xf32> to vector<16x32xf32>
    %56 = arith.addf %55, %46 : vector<16x32xf32>
    %57 = arith.negf %56 : vector<16x32xf32>
    %58 = math.exp %57 : vector<16x32xf32>
    %cst_24 = arith.constant 1.000000e+00 : f32
    %59 = vector.broadcast %cst_24 : f32 to vector<16x32xf32>
    %60 = arith.addf %59, %58 : vector<16x32xf32>
    %61 = arith.divf %59, %60 : vector<16x32xf32>
    %62 = vector.extract_strided_slice %12 {offsets = [16, 0], sizes = [16, 32], strides = [1, 1]} : vector<128x32xf32> to vector<16x32xf32>
    %63 = arith.addf %47, %18 : vector<16x32xf32>
    %64 = arith.mulf %54, %63 : vector<16x32xf32>
    %65 = arith.addf %62, %64 : vector<16x32xf32>
    %66 = math.tanh %65 : vector<16x32xf32>
    %67 = arith.subf %44, %66 : vector<16x32xf32>
    %68 = arith.mulf %61, %67 : vector<16x32xf32>
    %69 = arith.addf %66, %68 : vector<16x32xf32>
    %cst_25 = arith.constant dense<0.000000e+00> : vector<16x32xf32>
    %70 = tpu.matmul %69, %13, %cst_25 {dimension_numbers = #tpu.dot_dimension_numbers<[1], [0], [0], [1], [0, 0, 1, 1], [], []>} : vector<16x32xf32>, vector<32x32xf32>, vector<16x32xf32> -> vector<16x32xf32>
    %cst_26 = arith.constant dense<0.000000e+00> : vector<16x32xf32>
    %71 = tpu.matmul %69, %14, %cst_26 {dimension_numbers = #tpu.dot_dimension_numbers<[1], [0], [0], [1], [0, 0, 1, 1], [], []>} : vector<16x32xf32>, vector<32x32xf32>, vector<16x32xf32> -> vector<16x32xf32>
    %cst_27 = arith.constant dense<0.000000e+00> : vector<16x32xf32>
    %72 = tpu.matmul %69, %15, %cst_27 {dimension_numbers = #tpu.dot_dimension_numbers<[1], [0], [0], [1], [0, 0, 1, 1], [], []>} : vector<16x32xf32>, vector<32x32xf32>, vector<16x32xf32> -> vector<16x32xf32>
    %73 = vector.extract_strided_slice %10 {offsets = [32, 0], sizes = [16, 32], strides = [1, 1]} : vector<128x32xf32> to vector<16x32xf32>
    %74 = arith.addf %73, %70 : vector<16x32xf32>
    %75 = arith.negf %74 : vector<16x32xf32>
    %76 = math.exp %75 : vector<16x32xf32>
    %cst_28 = arith.constant 1.000000e+00 : f32
    %77 = vector.broadcast %cst_28 : f32 to vector<16x32xf32>
    %78 = arith.addf %77, %76 : vector<16x32xf32>
    %79 = arith.divf %77, %78 : vector<16x32xf32>
    %80 = vector.extract_strided_slice %11 {offsets = [32, 0], sizes = [16, 32], strides = [1, 1]} : vector<128x32xf32> to vector<16x32xf32>
    %81 = arith.addf %80, %71 : vector<16x32xf32>
    %82 = arith.negf %81 : vector<16x32xf32>
    %83 = math.exp %82 : vector<16x32xf32>
    %cst_29 = arith.constant 1.000000e+00 : f32
    %84 = vector.broadcast %cst_29 : f32 to vector<16x32xf32>
    %85 = arith.addf %84, %83 : vector<16x32xf32>
    %86 = arith.divf %84, %85 : vector<16x32xf32>
    %87 = vector.extract_strided_slice %12 {offsets = [32, 0], sizes = [16, 32], strides = [1, 1]} : vector<128x32xf32> to vector<16x32xf32>
    %88 = arith.addf %72, %18 : vector<16x32xf32>
    %89 = arith.mulf %79, %88 : vector<16x32xf32>
    %90 = arith.addf %87, %89 : vector<16x32xf32>
    %91 = math.tanh %90 : vector<16x32xf32>
    %92 = arith.subf %69, %91 : vector<16x32xf32>
    %93 = arith.mulf %86, %92 : vector<16x32xf32>
    %94 = arith.addf %91, %93 : vector<16x32xf32>
    %cst_30 = arith.constant dense<0.000000e+00> : vector<16x32xf32>
    %95 = tpu.matmul %94, %13, %cst_30 {dimension_numbers = #tpu.dot_dimension_numbers<[1], [0], [0], [1], [0, 0, 1, 1], [], []>} : vector<16x32xf32>, vector<32x32xf32>, vector<16x32xf32> -> vector<16x32xf32>
    %cst_31 = arith.constant dense<0.000000e+00> : vector<16x32xf32>
    %96 = tpu.matmul %94, %14, %cst_31 {dimension_numbers = #tpu.dot_dimension_numbers<[1], [0], [0], [1], [0, 0, 1, 1], [], []>} : vector<16x32xf32>, vector<32x32xf32>, vector<16x32xf32> -> vector<16x32xf32>
    %cst_32 = arith.constant dense<0.000000e+00> : vector<16x32xf32>
    %97 = tpu.matmul %94, %15, %cst_32 {dimension_numbers = #tpu.dot_dimension_numbers<[1], [0], [0], [1], [0, 0, 1, 1], [], []>} : vector<16x32xf32>, vector<32x32xf32>, vector<16x32xf32> -> vector<16x32xf32>
    %98 = vector.extract_strided_slice %10 {offsets = [48, 0], sizes = [16, 32], strides = [1, 1]} : vector<128x32xf32> to vector<16x32xf32>
    %99 = arith.addf %98, %95 : vector<16x32xf32>
    %100 = arith.negf %99 : vector<16x32xf32>
    %101 = math.exp %100 : vector<16x32xf32>
    %cst_33 = arith.constant 1.000000e+00 : f32
    %102 = vector.broadcast %cst_33 : f32 to vector<16x32xf32>
    %103 = arith.addf %102, %101 : vector<16x32xf32>
    %104 = arith.divf %102, %103 : vector<16x32xf32>
    %105 = vector.extract_strided_slice %11 {offsets = [48, 0], sizes = [16, 32], strides = [1, 1]} : vector<128x32xf32> to vector<16x32xf32>
    %106 = arith.addf %105, %96 : vector<16x32xf32>
    %107 = arith.negf %106 : vector<16x32xf32>
    %108 = math.exp %107 : vector<16x32xf32>
    %cst_34 = arith.constant 1.000000e+00 : f32
    %109 = vector.broadcast %cst_34 : f32 to vector<16x32xf32>
    %110 = arith.addf %109, %108 : vector<16x32xf32>
    %111 = arith.divf %109, %110 : vector<16x32xf32>
    %112 = vector.extract_strided_slice %12 {offsets = [48, 0], sizes = [16, 32], strides = [1, 1]} : vector<128x32xf32> to vector<16x32xf32>
    %113 = arith.addf %97, %18 : vector<16x32xf32>
    %114 = arith.mulf %104, %113 : vector<16x32xf32>
    %115 = arith.addf %112, %114 : vector<16x32xf32>
    %116 = math.tanh %115 : vector<16x32xf32>
    %117 = arith.subf %94, %116 : vector<16x32xf32>
    %118 = arith.mulf %111, %117 : vector<16x32xf32>
    %119 = arith.addf %116, %118 : vector<16x32xf32>
    %cst_35 = arith.constant dense<0.000000e+00> : vector<16x32xf32>
    %120 = tpu.matmul %119, %13, %cst_35 {dimension_numbers = #tpu.dot_dimension_numbers<[1], [0], [0], [1], [0, 0, 1, 1], [], []>} : vector<16x32xf32>, vector<32x32xf32>, vector<16x32xf32> -> vector<16x32xf32>
    %cst_36 = arith.constant dense<0.000000e+00> : vector<16x32xf32>
    %121 = tpu.matmul %119, %14, %cst_36 {dimension_numbers = #tpu.dot_dimension_numbers<[1], [0], [0], [1], [0, 0, 1, 1], [], []>} : vector<16x32xf32>, vector<32x32xf32>, vector<16x32xf32> -> vector<16x32xf32>
    %cst_37 = arith.constant dense<0.000000e+00> : vector<16x32xf32>
    %122 = tpu.matmul %119, %15, %cst_37 {dimension_numbers = #tpu.dot_dimension_numbers<[1], [0], [0], [1], [0, 0, 1, 1], [], []>} : vector<16x32xf32>, vector<32x32xf32>, vector<16x32xf32> -> vector<16x32xf32>
    %123 = vector.extract_strided_slice %10 {offsets = [64, 0], sizes = [16, 32], strides = [1, 1]} : vector<128x32xf32> to vector<16x32xf32>
    %124 = arith.addf %123, %120 : vector<16x32xf32>
    %125 = arith.negf %124 : vector<16x32xf32>
    %126 = math.exp %125 : vector<16x32xf32>
    %cst_38 = arith.constant 1.000000e+00 : f32
    %127 = vector.broadcast %cst_38 : f32 to vector<16x32xf32>
    %128 = arith.addf %127, %126 : vector<16x32xf32>
    %129 = arith.divf %127, %128 : vector<16x32xf32>
    %130 = vector.extract_strided_slice %11 {offsets = [64, 0], sizes = [16, 32], strides = [1, 1]} : vector<128x32xf32> to vector<16x32xf32>
    %131 = arith.addf %130, %121 : vector<16x32xf32>
    %132 = arith.negf %131 : vector<16x32xf32>
    %133 = math.exp %132 : vector<16x32xf32>
    %cst_39 = arith.constant 1.000000e+00 : f32
    %134 = vector.broadcast %cst_39 : f32 to vector<16x32xf32>
    %135 = arith.addf %134, %133 : vector<16x32xf32>
    %136 = arith.divf %134, %135 : vector<16x32xf32>
    %137 = vector.extract_strided_slice %12 {offsets = [64, 0], sizes = [16, 32], strides = [1, 1]} : vector<128x32xf32> to vector<16x32xf32>
    %138 = arith.addf %122, %18 : vector<16x32xf32>
    %139 = arith.mulf %129, %138 : vector<16x32xf32>
    %140 = arith.addf %137, %139 : vector<16x32xf32>
    %141 = math.tanh %140 : vector<16x32xf32>
    %142 = arith.subf %119, %141 : vector<16x32xf32>
    %143 = arith.mulf %136, %142 : vector<16x32xf32>
    %144 = arith.addf %141, %143 : vector<16x32xf32>
    %cst_40 = arith.constant dense<0.000000e+00> : vector<16x32xf32>
    %145 = tpu.matmul %144, %13, %cst_40 {dimension_numbers = #tpu.dot_dimension_numbers<[1], [0], [0], [1], [0, 0, 1, 1], [], []>} : vector<16x32xf32>, vector<32x32xf32>, vector<16x32xf32> -> vector<16x32xf32>
    %cst_41 = arith.constant dense<0.000000e+00> : vector<16x32xf32>
    %146 = tpu.matmul %144, %14, %cst_41 {dimension_numbers = #tpu.dot_dimension_numbers<[1], [0], [0], [1], [0, 0, 1, 1], [], []>} : vector<16x32xf32>, vector<32x32xf32>, vector<16x32xf32> -> vector<16x32xf32>
    %cst_42 = arith.constant dense<0.000000e+00> : vector<16x32xf32>
    %147 = tpu.matmul %144, %15, %cst_42 {dimension_numbers = #tpu.dot_dimension_numbers<[1], [0], [0], [1], [0, 0, 1, 1], [], []>} : vector<16x32xf32>, vector<32x32xf32>, vector<16x32xf32> -> vector<16x32xf32>
    %148 = vector.extract_strided_slice %10 {offsets = [80, 0], sizes = [16, 32], strides = [1, 1]} : vector<128x32xf32> to vector<16x32xf32>
    %149 = arith.addf %148, %145 : vector<16x32xf32>
    %150 = arith.negf %149 : vector<16x32xf32>
    %151 = math.exp %150 : vector<16x32xf32>
    %cst_43 = arith.constant 1.000000e+00 : f32
    %152 = vector.broadcast %cst_43 : f32 to vector<16x32xf32>
    %153 = arith.addf %152, %151 : vector<16x32xf32>
    %154 = arith.divf %152, %153 : vector<16x32xf32>
    %155 = vector.extract_strided_slice %11 {offsets = [80, 0], sizes = [16, 32], strides = [1, 1]} : vector<128x32xf32> to vector<16x32xf32>
    %156 = arith.addf %155, %146 : vector<16x32xf32>
    %157 = arith.negf %156 : vector<16x32xf32>
    %158 = math.exp %157 : vector<16x32xf32>
    %cst_44 = arith.constant 1.000000e+00 : f32
    %159 = vector.broadcast %cst_44 : f32 to vector<16x32xf32>
    %160 = arith.addf %159, %158 : vector<16x32xf32>
    %161 = arith.divf %159, %160 : vector<16x32xf32>
    %162 = vector.extract_strided_slice %12 {offsets = [80, 0], sizes = [16, 32], strides = [1, 1]} : vector<128x32xf32> to vector<16x32xf32>
    %163 = arith.addf %147, %18 : vector<16x32xf32>
    %164 = arith.mulf %154, %163 : vector<16x32xf32>
    %165 = arith.addf %162, %164 : vector<16x32xf32>
    %166 = math.tanh %165 : vector<16x32xf32>
    %167 = arith.subf %144, %166 : vector<16x32xf32>
    %168 = arith.mulf %161, %167 : vector<16x32xf32>
    %169 = arith.addf %166, %168 : vector<16x32xf32>
    %cst_45 = arith.constant dense<0.000000e+00> : vector<16x32xf32>
    %170 = tpu.matmul %169, %13, %cst_45 {dimension_numbers = #tpu.dot_dimension_numbers<[1], [0], [0], [1], [0, 0, 1, 1], [], []>} : vector<16x32xf32>, vector<32x32xf32>, vector<16x32xf32> -> vector<16x32xf32>
    %cst_46 = arith.constant dense<0.000000e+00> : vector<16x32xf32>
    %171 = tpu.matmul %169, %14, %cst_46 {dimension_numbers = #tpu.dot_dimension_numbers<[1], [0], [0], [1], [0, 0, 1, 1], [], []>} : vector<16x32xf32>, vector<32x32xf32>, vector<16x32xf32> -> vector<16x32xf32>
    %cst_47 = arith.constant dense<0.000000e+00> : vector<16x32xf32>
    %172 = tpu.matmul %169, %15, %cst_47 {dimension_numbers = #tpu.dot_dimension_numbers<[1], [0], [0], [1], [0, 0, 1, 1], [], []>} : vector<16x32xf32>, vector<32x32xf32>, vector<16x32xf32> -> vector<16x32xf32>
    %173 = vector.extract_strided_slice %10 {offsets = [96, 0], sizes = [16, 32], strides = [1, 1]} : vector<128x32xf32> to vector<16x32xf32>
    %174 = arith.addf %173, %170 : vector<16x32xf32>
    %175 = arith.negf %174 : vector<16x32xf32>
    %176 = math.exp %175 : vector<16x32xf32>
    %cst_48 = arith.constant 1.000000e+00 : f32
    %177 = vector.broadcast %cst_48 : f32 to vector<16x32xf32>
    %178 = arith.addf %177, %176 : vector<16x32xf32>
    %179 = arith.divf %177, %178 : vector<16x32xf32>
    %180 = vector.extract_strided_slice %11 {offsets = [96, 0], sizes = [16, 32], strides = [1, 1]} : vector<128x32xf32> to vector<16x32xf32>
    %181 = arith.addf %180, %171 : vector<16x32xf32>
    %182 = arith.negf %181 : vector<16x32xf32>
    %183 = math.exp %182 : vector<16x32xf32>
    %cst_49 = arith.constant 1.000000e+00 : f32
    %184 = vector.broadcast %cst_49 : f32 to vector<16x32xf32>
    %185 = arith.addf %184, %183 : vector<16x32xf32>
    %186 = arith.divf %184, %185 : vector<16x32xf32>
    %187 = vector.extract_strided_slice %12 {offsets = [96, 0], sizes = [16, 32], strides = [1, 1]} : vector<128x32xf32> to vector<16x32xf32>
    %188 = arith.addf %172, %18 : vector<16x32xf32>
    %189 = arith.mulf %179, %188 : vector<16x32xf32>
    %190 = arith.addf %187, %189 : vector<16x32xf32>
    %191 = math.tanh %190 : vector<16x32xf32>
    %192 = arith.subf %169, %191 : vector<16x32xf32>
    %193 = arith.mulf %186, %192 : vector<16x32xf32>
    %194 = arith.addf %191, %193 : vector<16x32xf32>
    %cst_50 = arith.constant dense<0.000000e+00> : vector<16x32xf32>
    %195 = tpu.matmul %194, %13, %cst_50 {dimension_numbers = #tpu.dot_dimension_numbers<[1], [0], [0], [1], [0, 0, 1, 1], [], []>} : vector<16x32xf32>, vector<32x32xf32>, vector<16x32xf32> -> vector<16x32xf32>
    %cst_51 = arith.constant dense<0.000000e+00> : vector<16x32xf32>
    %196 = tpu.matmul %194, %14, %cst_51 {dimension_numbers = #tpu.dot_dimension_numbers<[1], [0], [0], [1], [0, 0, 1, 1], [], []>} : vector<16x32xf32>, vector<32x32xf32>, vector<16x32xf32> -> vector<16x32xf32>
    %cst_52 = arith.constant dense<0.000000e+00> : vector<16x32xf32>
    %197 = tpu.matmul %194, %15, %cst_52 {dimension_numbers = #tpu.dot_dimension_numbers<[1], [0], [0], [1], [0, 0, 1, 1], [], []>} : vector<16x32xf32>, vector<32x32xf32>, vector<16x32xf32> -> vector<16x32xf32>
    %198 = vector.extract_strided_slice %10 {offsets = [112, 0], sizes = [16, 32], strides = [1, 1]} : vector<128x32xf32> to vector<16x32xf32>
    %199 = arith.addf %198, %195 : vector<16x32xf32>
    %200 = arith.negf %199 : vector<16x32xf32>
    %201 = math.exp %200 : vector<16x32xf32>
    %cst_53 = arith.constant 1.000000e+00 : f32
    %202 = vector.broadcast %cst_53 : f32 to vector<16x32xf32>
    %203 = arith.addf %202, %201 : vector<16x32xf32>
    %204 = arith.divf %202, %203 : vector<16x32xf32>
    %205 = vector.extract_strided_slice %11 {offsets = [112, 0], sizes = [16, 32], strides = [1, 1]} : vector<128x32xf32> to vector<16x32xf32>
    %206 = arith.addf %205, %196 : vector<16x32xf32>
    %207 = arith.negf %206 : vector<16x32xf32>
    %208 = math.exp %207 : vector<16x32xf32>
    %cst_54 = arith.constant 1.000000e+00 : f32
    %209 = vector.broadcast %cst_54 : f32 to vector<16x32xf32>
    %210 = arith.addf %209, %208 : vector<16x32xf32>
    %211 = arith.divf %209, %210 : vector<16x32xf32>
    %212 = vector.extract_strided_slice %12 {offsets = [112, 0], sizes = [16, 32], strides = [1, 1]} : vector<128x32xf32> to vector<16x32xf32>
    %213 = arith.addf %197, %18 : vector<16x32xf32>
    %214 = arith.mulf %204, %213 : vector<16x32xf32>
    %215 = arith.addf %212, %214 : vector<16x32xf32>
    %216 = math.tanh %215 : vector<16x32xf32>
    %217 = arith.subf %194, %216 : vector<16x32xf32>
    %218 = arith.mulf %211, %217 : vector<16x32xf32>
    %219 = arith.addf %216, %218 : vector<16x32xf32>
    %c0_55 = arith.constant 0 : index
    %c0_56 = arith.constant 0 : index
    %220 = vector.load %arg7[%c0_55, %c0_56] : memref<16x32xf32, #tpu.memory_space<vmem>>, vector<16x32xf32>
    tpu.vector_store %arg7[%c0_55, %c0_56], %219 {strides = array<i32>} : memref<16x32xf32, #tpu.memory_space<vmem>>, vector<16x32xf32>,
    return
  }
  func.func @transform_0(%arg0: i32) -> (i32, i32, i32) {
    %c0_i32 = arith.constant 0 : i32
    %c0_i32_0 = arith.constant 0 : i32
    %c0_i32_1 = arith.constant 0 : i32
    return %c0_i32, %arg0, %c0_i32_0 : i32, i32, i32
  }
  func.func @transform_1(%arg0: i32) -> (i32, i32) {
    %c0_i32 = arith.constant 0 : i32
    %c0_i32_0 = arith.constant 0 : i32
    %c0_i32_1 = arith.constant 0 : i32
    return %c0_i32, %c0_i32_0 : i32, i32
  }
  func.func @transform_2(%arg0: i32) -> (i32, i32) {
    %c0_i32 = arith.constant 0 : i32
    %c0_i32_0 = arith.constant 0 : i32
    %c0_i32_1 = arith.constant 0 : i32
    return %c0_i32, %c0_i32_0 : i32, i32
  }
  func.func @transform_3(%arg0: i32) -> (i32, i32) {
    %c0_i32 = arith.constant 0 : i32
    %c0_i32_0 = arith.constant 0 : i32
    %c0_i32_1 = arith.constant 0 : i32
    return %c0_i32, %c0_i32_0 : i32, i32
  }
  func.func @transform_4(%arg0: i32) -> (i32, i32) {
    %c0_i32 = arith.constant 0 : i32
    %c0_i32_0 = arith.constant 0 : i32
    %c0_i32_1 = arith.constant 0 : i32
    return %c0_i32, %c0_i32_0 : i32, i32
  }
  func.func @transform_5(%arg0: i32) -> (i32, i32) {
    %c0_i32 = arith.constant 0 : i32
    %c0_i32_0 = arith.constant 0 : i32
    %c0_i32_1 = arith.constant 0 : i32
    return %c0_i32, %c0_i32_0 : i32, i32
  }
  func.func @transform_6(%arg0: i32) -> (i32, i32) {
    %c0_i32 = arith.constant 0 : i32
    %c0_i32_0 = arith.constant 0 : i32
    return %arg0, %c0_i32 : i32, i32
  }
}

</mosaic_0001>

<bundles_post_ra>
// kernel: embedding_network_forward.1
= control target key start
LH: loop header
LB: loop body
LE: loop exit
PB: predicated region body
PF: predicated region fallthrough
CT: control target
= control target key end

     0   :  { %v3588_v3 = vmov 0   ;;  %vm178_vm0 = vcmask 1041408   ;;  %v3589_v6 = vmov 0.0   ;;  %s4331_s0 = inlined_call_operand.vmem [shape: s32[8,16,1], index: 0, kind: input, shape index: {}]   ;;  %s4332_s1 = inlined_call_operand.vmem [shape: f32[50,96], index: 1, kind: input, shape index: {}]   ;;  %s4333_s2 = inlined_call_operand.vmem [shape: f32[32,32], index: 2, kind: input, shape index: {}]   ;;  %s4334_s3 = inlined_call_operand.vmem [shape: f32[32,32], index: 3, kind: input, shape index: {}]   ;;  %s4335_s4 = inlined_call_operand.vmem [shape: f32[32,32], index: 4, kind: input, shape index: {}]   ;;  %s4336_s5 = inlined_call_operand.vmem [shape: f32[1,32], index: 5, kind: input, shape index: {}]   ;;  %s4337_s6 = inlined_call_operand.hbm [shape: f32[16,32], index: 6, kind: output, shape index: {}]  }
   0x1   :  { %v3634_v0 = vld [vmem:[%s4333_s2 + $0x18] sm:$0xff]  ;;  %v24_v1 = vld [vmem:[%s4331_s0] sm:$0xff]  ;;  %v3642_v2 = vld [vmem:[%s4333_s2 + $0x10] sm:$0xff]  ;;  %3391 = vset.pattern.permute.xlu0 %v3588_v3  ;;  %3127 = vmatprep.mubr.f32.mxu1 %v3589_v6 }
   0x2   :  { %3119 = vmatprep.subr.mxu1 %v3634_v0  ;;  %43 = vperm.xlu0 %3391, %v24_v1   ;;  %v3650_v4 = vld [vmem:[%s4333_s2 + $0x8] sm:$0xff]  ;;  %v128_v7 = vld [vmem:[%s4332_s1 + $0x30] sm:$0x3]  ;;  %v3664_v8 = vld [vmem:[%s4333_s2] sm:$0xff] }
   0x3   :  { %3120 = vmatpush3.msra.mxu1 %v3634_v0  ;;  %v25_v5 = vld [vmem:[%s4331_s0 + $0x8] sm:$0xff]  ;;  %3081 = vmatprep.subr.msk.mxu0 %vm178_vm0, %v128_v7  ;;  %v3674_v10 = vld [vmem:[%s4334_s3 + $0x18] sm:$0xff] }
   0x4   :  { %3121 = vmatprep.subr.mxu1 %v3642_v2  ;;  %v127_v9 = vld [vmem:[%s4332_s1 + $0x28] sm:$0xff]  ;;  %3082 = vmatpush3.msk.msra.mxu0 %vm178_vm0, %v128_v7 }
   0x5   :  { %3122 = vmatpush3.msra.mxu1 %v3642_v2  ;;  %3083 = vmatprep.subr.mxu0 %v127_v9 }
   0x6   :  { %3123 = vmatprep.subr.mxu1 %v3650_v4  ;;  %46 = vperm.xlu0 %3391, %v25_v5  }
   0x7   :  { %3124 = vmatpush3.msra.mxu1 %v3650_v4 }
   0x8   :  { %3125 = vmatprep.subr.mxu1 %v3664_v8 }
   0x9   :  { %11 = vsyncpa [#allocation3], 0  ;;  %3126 = vmatpush3.msra.mxu1 %v3664_v8  ;;  %v3681_v11 = vld [vmem:[%s4334_s3 + $0x10] sm:$0xff]  ;;  %3084 = vmatpush3.msra.mxu0 %v127_v9  ;;  %v126_v12 = vld [vmem:[%s4332_s1 + $0x20] sm:$0xff]  ;;  %v40_v23 = vlaneseq  ;;  %vm129_vm1 = vcmask 408576   ;;  %s3590_s14 = smov 32  }
   0xa   :  { %3130 = vmatprep.subr.mxu1 %v3674_v10  ;;  %3128 = vmatmul.mubr.f32.vlgmr.msra.gmra.mxu1 %v3589_v6  ;;  %v3692_v13 = vld [vmem:[%s4334_s3 + $0x8] sm:$0xff]  ;;  %v125_v14 = vld [vmem:[%s4332_s1 + $0x18] sm:$0xff]  ;;  %v3703_v15 = vld [vmem:[%s4334_s3] sm:$0xff]  ;;  %s3591_s17 = smov 64   ;;  %s3592_s18 = smov 96   ;;  %vm346_vm8 = vcmask 261120  }
   0xb   :  { %3131 = vmatpush3.msra.mxu1 %v3674_v10  ;;  %3138 = vmatprep.mubr.f32.mxu1 %v3589_v6  ;;  %v124_v16 = vld [vmem:[%s4332_s1 + $0x10] sm:$0xff]  ;;  %v123_v17 = vld [vmem:[%s4332_s1 + $0x8] sm:$0xff]  ;;  %v3717_v18 = vld [vmem:[%s4335_s4 + $0x18] sm:$0xff]  ;;  %v3760_v24 = vand.u32 127, %v40_v23 }
   0xc   :  { %3132 = vmatprep.subr.mxu1 %v3681_v11  ;;  %3085 = vmatprep.subr.mxu0 %v126_v12  ;;  %v122_v19 = vld [vmem:[%s4332_s1] sm:$0xff]  ;;  %v3727_v20 = vld [vmem:[%s4335_s4 + $0x10] sm:$0xff]  ;;  %v3734_v21 = vld [vmem:[%s4335_s4 + $0x8] sm:$0xff] }
   0xd   :  { %3133 = vmatpush3.msra.mxu1 %v3681_v11  ;;  %3086 = vmatpush3.msra.mxu0 %v126_v12  ;;  %v3741_v22 = vld [vmem:[%s4335_s4] sm:$0xff] }
   0xe   :  { %3134 = vmatprep.subr.mxu1 %v3692_v13  ;;  %3087 = vmatprep.subr.mxu0 %v125_v14  ;;  %v3780_v44 = vld [vmem:[%s4336_s5] ss:$0 sm:$0xff] }
   0xf   :  { %3135 = vmatpush3.msra.mxu1 %v3692_v13  ;;  %3088 = vmatpush3.msra.mxu0 %v125_v14 }
  0x10   :  { %3136 = vmatprep.subr.mxu1 %v3703_v15  ;;  %3089 = vmatprep.subr.mxu0 %v124_v16 }
  0x11   :  { %3137 = vmatpush3.msra.mxu1 %v3703_v15  ;;  %3090 = vmatpush3.msra.mxu0 %v124_v16 }
  0x12   :  { %3139 = vmatmul.mubr.f32.vlgmr.msra.gmra.mxu1 %v3589_v6  ;;  %3091 = vmatprep.subr.mxu0 %v123_v17 }
  0x13   :  { %3092 = vmatpush3.msra.mxu0 %v123_v17  ;;  %3141 = vmatprep.subr.mxu1 %v3717_v18 }
  0x14   :  { %3093 = vmatprep.subr.mxu0 %v122_v19  ;;  %3142 = vmatpush3.msra.mxu1 %v3717_v18 }
  0x15   :  { %3094 = vmatpush3.msra.mxu0 %v122_v19  ;;  %3143 = vmatprep.subr.mxu1 %v3727_v20 }
  0x16   :  { %3144 = vmatpush3.msra.mxu1 %v3727_v20  ;;  %3149 = vmatprep.mubr.f32.mxu1 %v3589_v6 }
  0x17   :  { %3145 = vmatprep.subr.mxu1 %v3734_v21  ;;  %3392 = vset.pattern.permute.xlu1 %v3588_v3 }
  0x18   :  { %3146 = vmatpush3.msra.mxu1 %v3734_v21  ;;  %3174 = vmatprep.subr.mxu0 %v3717_v18 }
  0x19   :  { %3147 = vmatprep.subr.mxu1 %v3741_v22 }
  0x1a   :  { %3148 = vmatpush3.msra.mxu1 %v3741_v22 }
  0x1b   :  { %3150 = vmatmul.mubr.f32.vlgmr.msra.gmra.mxu1 %v3589_v6  ;;  %3152 = vmatprep.subr.mxu1 %v3634_v0 }
  0x1c   :  { %3153 = vmatpush3.msra.mxu1 %v3634_v0 }
  0x1d   :  { %3154 = vmatprep.subr.mxu1 %v3642_v2 }
  0x1e   :  { %3155 = vmatpush3.msra.mxu1 %v3642_v2 }
  0x1f   :  { %3156 = vmatprep.subr.mxu1 %v3650_v4 }
  0x20   :  { %3157 = vmatpush3.msra.mxu1 %v3650_v4 }
  0x21   :  { %3158 = vmatprep.subr.mxu1 %v3664_v8 }
  0x22   :  { %3159 = vmatpush3.msra.mxu1 %v3664_v8 }
  0x23   :  { %3163 = vmatprep.subr.mxu1 %v3674_v10 }
  0x7d   :  { %v44_v25 = vpop.permute.xlu0 %43 }
  0x7e   :  { %vm90_vm2 = vcmp.eq.s32.totalorder %v3760_v24, %v44_v25  ;;  %v26_v25 = vld [vmem:[%s4331_s0 + $0x10] sm:$0xff] }
  0x7f   :  { %v106_v26 = vsel %vm90_vm2, 1.0, %v3589_v6 }
  0x80   :  { %3095 = vmatprep.mubr.msk.f32.mxu0 %vm129_vm1, %v106_v26 }
  0x81   :  { %v47_v27 = vpop.permute.xlu0 %46 }
  0x82   :  { %vm91_vm3 = vcmp.eq.s32.totalorder %v3760_v24, %v47_v27  ;;  %v27_v27 = vld [vmem:[%s4331_s0 + $0x18] sm:$0xff] }
  0x83   :  { %v107_v28 = vsel %vm91_vm3, 1.0, %v3589_v6 }
  0x84   :  { %3096 = vmatmul.mubr.msk.f32.vlgmr.msra.gmra.mxu0 %vm129_vm1, %v107_v28  ;;  %v28_v28 = vld [vmem:[%s4331_s0 + $0x20] sm:$0xff] }
  0x85   :  { %3175 = vmatpush3.msra.mxu0 %v3717_v18 }
  0x86   :  { %3176 = vmatprep.subr.mxu0 %v3727_v20 }
  0x87   :  { %3177 = vmatpush3.msra.mxu0 %v3727_v20 }
  0x88   :  { %3178 = vmatprep.subr.mxu0 %v3734_v21 }
  0x89   :  { %3179 = vmatpush3.msra.mxu0 %v3734_v21 }
  0x8a   :  { %3180 = vmatprep.subr.mxu0 %v3741_v22 }
  0x8b   :  { %3181 = vmatpush3.msra.mxu0 %v3741_v22 }
  0x8c   :  { %3196 = vmatprep.subr.mxu0 %v3674_v10 }
  0xca   :  { %v3129_v29 = vpop.f32.mrf.mxu1 }
  0xcc   :  { %v416_v30 = vpop.f32.mrf.mxu1 }
  0xd2   :  { %v3140_v31 = vpop.f32.mrf.mxu1 }
  0xd4   :  { %v491_v32 = vpop.f32.mrf.mxu1 }
  0xd5   :  { %516 = vrot.lane.b32.xlu0 %v491_v32, %s3590_s14  ;;  %v35_v32 = vld [vmem:[%s4331_s0 + $0x58] sm:$0xff] }
  0xdb   :  { %v3151_v43 = vpop.f32.mrf.mxu1 }
  0xdc   :  { %v608_v48 = vadd.f32 %v3151_v43, %v3780_v44  ;;  %v34_v43 = vld [vmem:[%s4331_s0 + $0x50] sm:$0xff] }
  0xdd   :  { %v602_v45 = vpop.f32.mrf.mxu1 }
  0xde   :  { %v603_v46 = vadd.f32 %v3780_v44, %v602_v45 }
 0x144   :  { %v3097_v33 = vpop.f32.mrf.mxu0 }
 0x145   :  { %v501_v34 = vadd.f32 %v3129_v29, %v3097_v33  ;;  %v29_v29 = vld [vmem:[%s4331_s0 + $0x28] sm:$0xff] }
 0x146   :  { %v248_v35 = vpop.f32.mrf.mxu0 }
 0x147   :  { %v2841_v36 = vmul.f32 -1.442695, %v501_v34  ;;  %v500_v37 = vadd.f32 %v416_v30, %v248_v35  ;;  %v517_v60 = vpop.permute.xlu0 %516  ;;  %v31_v30 = vld [vmem:[%s4331_s0 + $0x38] sm:$0xff] }
 0x148   :  { %v522_v61 = vadd.f32 %v517_v60, %v248_v35  ;;  %v39_v34 = vld [vmem:[%s4331_s0 + $0x78] sm:$0xff] }
 0x149   :  { %3393 = vpow2.f32 %v2841_v36  ;;  %v2840_v38 = vmul.f32 -1.442695, %v500_v37 }
 0x14a   :  { %v2842_v63 = vmul.f32 -1.442695, %v522_v61 }
 0x14b   :  { %3395 = vpow2.f32 %v2840_v38 }
 0x156   :  { %v3394_v39 = vpop.eup %3393 }
 0x157   :  { %v509_v41 = vadd.f32 1.0, %v3394_v39  ;;  %v30_v39 = vld [vmem:[%s4331_s0 + $0x30] sm:$0xff] }
 0x158   :  { %v3396_v40 = vpop.eup %3395 }
 0x159   :  { %v508_v42 = vadd.f32 1.0, %v3396_v40  ;;  %v32_v40 = vld [vmem:[%s4331_s0 + $0x40] sm:$0xff] }
 0x15b   :  { %3397 = vrcp.f32 %v508_v42 }
 0x15c   :  { %3399 = vrcp.f32 %v509_v41 }
 0x168   :  { %v3398_v47 = vpop.eup %3397 }
 0x169   :  { %v611_v49 = vmul.f32 %v3398_v47, %v603_v46  ;;  %v3400_v50 = vpop.eup %3399  ;;  %v36_v47 = vld [vmem:[%s4331_s0 + $0x60] sm:$0xff] }
 0x16a   :  { %v612_v51 = vmul.f32 %v3400_v50, %v608_v48  ;;  %v38_v50 = vld [vmem:[%s4331_s0 + $0x70] sm:$0xff] }
 0x16b   :  { %615 = vrot.lane.b32.xlu1 %v611_v49, %s3591_s17 }
 0x16f   :  { %617 = vrot.lane.b32.xlu1 %v612_v51, %s3591_s17 }
 0x173   :  { %518 = vrot.lane.b32.xlu1 %v3140_v31, %s3590_s14  ;;  %v33_v31 = vld [vmem:[%s4331_s0 + $0x48] sm:$0xff] }
 0x1dd   :  { %v616_v52 = vpop.permute.xlu1 %615 }
 0x1de   :  { %v621_v53 = vadd.f32 %v616_v52, %v248_v35 }
 0x1e0   :  { %3401 = vtanh.f32 %v621_v53 }
 0x1e1   :  { %v618_v54 = vpop.permute.xlu1 %617 }
 0x1e2   :  { %v622_v55 = vadd.f32 %v3097_v33, %v618_v54 }
 0x1e4   :  { %3403 = vtanh.f32 %v622_v55 }
 0x1e5   :  { %v519_v62 = vpop.permute.xlu1 %518  ;;  %3405 = vpow2.f32 %v2842_v63 }
 0x1e6   :  { %v523_v1 = vadd.f32 %v3097_v33, %v519_v62  ;;  %v37_v33 = vld [vmem:[%s4331_s0 + $0x68] sm:$0xff] }
 0x1e8   :  { %v2843_v3 = vmul.f32 -1.442695, %v523_v1 }
 0x1ea   :  { %3407 = vpow2.f32 %v2843_v3 }
 0x1ed   :  { %v3402_v56 = vpop.eup %3401 }
 0x1ee   :  { %v625_v57 = vsub.f32 0.0, %v3402_v56 }
 0x1f0   :  { %629 = vrot.lane.b32.xlu0 %v625_v57, %s3592_s18 }
 0x1f1   :  { %v3404_v58 = vpop.eup %3403 }
 0x1f2   :  { %v626_v59 = vsub.f32 0.0, %v3404_v58  ;;  %v3406_v5 = vpop.eup %3405 }
 0x1f3   :  { %v530_v7 = vadd.f32 1.0, %v3406_v5 }
 0x1f4   :  { %631 = vrot.lane.b32.xlu1 %v626_v59, %s3592_s18 }
 0x1f5   :  { %3409 = vrcp.f32 %v530_v7 }
 0x1f7   :  { %v3408_v9 = vpop.eup %3407 }
 0x1f8   :  { %v531_v12 = vadd.f32 1.0, %v3408_v9 }
 0x1fa   :  { %3411 = vrcp.f32 %v531_v12 }
 0x202   :  { %v3410_v14 = vpop.eup %3409 }
 0x207   :  { %v3412_v19 = vpop.eup %3411 }
 0x262   :  { %v630_v16 = vpop.permute.xlu0 %629 }
 0x263   :  { %v635_v17 = vmul.f32 %v3410_v14, %v630_v16 }
 0x265   :  { %639 = vrot.lane.b32.xlu0 %v635_v17, %s3590_s14 }
 0x266   :  { %v632_v23 = vpop.permute.xlu1 %631 }
 0x267   :  { %v636_v26 = vmul.f32 %v3412_v19, %v632_v23 }
 0x269   :  { %641 = vrot.lane.b32.xlu1 %v636_v26, %s3590_s14  ;;  %49 = vperm.xlu0 %3391, %v26_v25  }
 0x26d   :  { %52 = vperm.xlu1 %3392, %v27_v27  }
 0x271   :  { %55 = vperm.xlu1 %3392, %v28_v28  }
 0x275   :  { %58 = vperm.xlu1 %3392, %v29_v29  }
 0x279   :  { %64 = vperm.xlu1 %3392, %v31_v30  }
 0x27d   :  { %70 = vperm.xlu1 %3392, %v33_v31  }
 0x281   :  { %76 = vperm.xlu1 %3392, %v35_v32  }
 0x285   :  { %82 = vperm.xlu1 %3392, %v37_v33  }
 0x289   :  { %88 = vperm.xlu1 %3392, %v39_v34  }
 0x2d7   :  { %v640_v35 = vpop.permute.xlu0 %639 }
 0x2d8   :  { %v3818_v36 = vadd.f32 %v3402_v56, %v640_v35 }
 0x2da   :  { %649 = vrot.lane.b32.xlu0 %v3818_v36, %s3591_s17 }
 0x2db   :  { %v642_v37 = vpop.permute.xlu1 %641 }
 0x2dc   :  { %v3822_v38 = vadd.f32 %v3404_v58, %v642_v37 }
 0x2de   :  { %651 = vrot.lane.b32.xlu0 %v3822_v38, %s3591_s17 }
 0x2e2   :  { %61 = vperm.xlu0 %3391, %v30_v39  }
 0x2e4   :  { %v50_v41 = vpop.permute.xlu0 %49 }
 0x2e5   :  { %vm92_vm4 = vcmp.eq.s32.totalorder %v3760_v24, %v50_v41 }
 0x2e6   :  { %v108_v42 = vsel %vm92_vm4, 1.0, %v3589_v6  ;;  %67 = vperm.xlu0 %3391, %v32_v40  }
 0x2e7   :  { %3098 = vmatprep.mubr.msk.f32.mxu0 %vm129_vm1, %v108_v42 }
 0x2e8   :  { %v53_v45 = vpop.permute.xlu1 %52 }
 0x2e9   :  { %vm93_vm5 = vcmp.eq.s32.totalorder %v3760_v24, %v53_v45 }
 0x2ea   :  { %73 = vperm.xlu0 %3391, %v34_v43   ;;  %v109_v46 = vsel %vm93_vm5, 1.0, %v3589_v6 }
 0x2eb   :  { %3099 = vmatmul.mubr.msk.f32.gmra.mxu0 %vm129_vm1, %v109_v46 }
 0x2ec   :  { %v56_v48 = vpop.permute.xlu1 %55 }
 0x2ed   :  { %vm94_vm6 = vcmp.eq.s32.totalorder %v3760_v24, %v56_v48 }
 0x2ee   :  { %79 = vperm.xlu0 %3391, %v36_v47   ;;  %v110_v49 = vsel %vm94_vm6, 1.0, %v3589_v6 }
 0x2ef   :  { %3101 = vmatprep.mubr.msk.f32.mxu0 %vm129_vm1, %v110_v49 }
 0x2f0   :  { %v59_v51 = vpop.permute.xlu1 %58 }
 0x2f1   :  { %vm95_vm7 = vcmp.eq.s32.totalorder %v3760_v24, %v59_v51 }
 0x2f2   :  { %85 = vperm.xlu0 %3391, %v38_v50   ;;  %v111_v52 = vsel %vm95_vm7, 1.0, %v3589_v6 }
 0x2f3   :  { %3102 = vmatmul.mubr.msk.f32.gmra.mxu0 %vm129_vm1, %v111_v52 }
 0x2f4   :  { %v65_v55 = vpop.permute.xlu1 %64 }
 0x2f5   :  { %vm97_vm9 = vcmp.eq.s32.totalorder %v3760_v24, %v65_v55 }
 0x2f6   :  { %v113_v60 = vsel %vm97_vm9, 1.0, %v3589_v6 }
 0x2f8   :  { %v71_v56 = vpop.permute.xlu1 %70 }
 0x2f9   :  { %vm99_vm11 = vcmp.eq.s32.totalorder %v3760_v24, %v71_v56 }
 0x2fa   :  { %v115_v63 = vsel %vm99_vm11, 1.0, %v3589_v6 }
 0x2fc   :  { %v77_v58 = vpop.permute.xlu1 %76 }
 0x2fd   :  { %vm101_vm13 = vcmp.eq.s32.totalorder %v3760_v24, %v77_v58 }
 0x2fe   :  { %v117_v7 = vsel %vm101_vm13, 1.0, %v3589_v6 }
 0x300   :  { %v83_v1 = vpop.permute.xlu1 %82 }
 0x301   :  { %vm103_vm15 = vcmp.eq.s32.totalorder %v3760_v24, %v83_v1 }
 0x302   :  { %v119_v16 = vsel %vm103_vm15, 1.0, %v3589_v6 }
 0x304   :  { %v89_v12 = vpop.permute.xlu1 %88 }
 0x305   :  { %vm105_vm2 = vcmp.eq.s32.totalorder %v3760_v24, %v89_v12 }
 0x306   :  { %v121_v23 = vsel %vm105_vm2, 1.0, %v3589_v6 }
 0x34c   :  { %v650_v53 = vpop.permute.xlu0 %649 }
 0x34d   :  { %3160 = vmatprep.mubr.msk.f32.mxu1 %vm346_vm8, %v650_v53 }
 0x350   :  { %v652_v54 = vpop.permute.xlu0 %651 }
 0x351   :  { %3161 = vmatmul.mubr.msk.f32.vlgmr.msra.gmra.mxu1 %vm346_vm8, %v652_v54 }
 0x352   :  { %3164 = vmatpush3.msra.mxu1 %v3674_v10  ;;  %3171 = vmatprep.mubr.msk.f32.mxu1 %vm346_vm8, %v650_v53 }
 0x353   :  { %3165 = vmatprep.subr.mxu1 %v3681_v11 }
 0x354   :  { %3166 = vmatpush3.msra.mxu1 %v3681_v11 }
 0x355   :  { %3167 = vmatprep.subr.mxu1 %v3692_v13 }
 0x356   :  { %3168 = vmatpush3.msra.mxu1 %v3692_v13 }
 0x357   :  { %3169 = vmatprep.subr.mxu1 %v3703_v15 }
 0x358   :  { %3170 = vmatpush3.msra.mxu1 %v3703_v15 }
 0x359   :  { %3172 = vmatmul.mubr.msk.f32.vlgmr.msra.gmra.mxu1 %vm346_vm8, %v652_v54  ;;  %3185 = vmatprep.subr.mxu1 %v3634_v0 }
 0x35a   :  { %3186 = vmatpush3.msra.mxu1 %v3634_v0 }
 0x35b   :  { %3187 = vmatprep.subr.mxu1 %v3642_v2 }
 0x35c   :  { %3188 = vmatpush3.msra.mxu1 %v3642_v2 }
 0x35d   :  { %v62_v57 = vpop.permute.xlu0 %61  ;;  %3189 = vmatprep.subr.mxu1 %v3650_v4 }
 0x35e   :  { %vm96_vm10 = vcmp.eq.s32.totalorder %v3760_v24, %v62_v57  ;;  %3190 = vmatpush3.msra.mxu1 %v3650_v4 }
 0x35f   :  { %v112_v59 = vsel %vm96_vm10, 1.0, %v3589_v6  ;;  %3191 = vmatprep.subr.mxu1 %v3664_v8 }
 0x360   :  { %3104 = vmatprep.mubr.msk.f32.mxu0 %vm129_vm1, %v112_v59  ;;  %3192 = vmatpush3.msra.mxu1 %v3664_v8 }
 0x361   :  { %3105 = vmatmul.mubr.msk.f32.gmra.mxu0 %vm129_vm1, %v113_v60  ;;  %v68_v61 = vpop.permute.xlu0 %67  ;;  %3207 = vmatprep.subr.mxu1 %v3717_v18 }
 0x362   :  { %vm98_vm12 = vcmp.eq.s32.totalorder %v3760_v24, %v68_v61 }
 0x363   :  { %v114_v62 = vsel %vm98_vm12, 1.0, %v3589_v6 }
 0x364   :  { %3107 = vmatprep.mubr.msk.f32.mxu0 %vm129_vm1, %v114_v62 }
 0x365   :  { %3108 = vmatmul.mubr.msk.f32.gmra.mxu0 %vm129_vm1, %v115_v63  ;;  %v74_v3 = vpop.permute.xlu0 %73 }
 0x366   :  { %vm100_vm14 = vcmp.eq.s32.totalorder %v3760_v24, %v74_v3 }
 0x367   :  { %v116_v5 = vsel %vm100_vm14, 1.0, %v3589_v6 }
 0x368   :  { %3110 = vmatprep.mubr.msk.f32.mxu0 %vm129_vm1, %v116_v5 }
 0x369   :  { %3111 = vmatmul.mubr.msk.f32.gmra.mxu0 %vm129_vm1, %v117_v7  ;;  %v80_v9 = vpop.permute.xlu0 %79 }
 0x36a   :  { %vm102_vm0 = vcmp.eq.s32.totalorder %v3760_v24, %v80_v9 }
 0x36b   :  { %v118_v14 = vsel %vm102_vm0, 1.0, %v3589_v6 }
 0x36c   :  { %3113 = vmatprep.mubr.msk.f32.mxu0 %vm129_vm1, %v118_v14 }
 0x36d   :  { %3114 = vmatmul.mubr.msk.f32.gmra.mxu0 %vm129_vm1, %v119_v16  ;;  %v86_v17 = vpop.permute.xlu0 %85 }
 0x36e   :  { %vm104_vm3 = vcmp.eq.s32.totalorder %v3760_v24, %v86_v17 }
 0x36f   :  { %v120_v19 = vsel %vm104_vm3, 1.0, %v3589_v6 }
 0x370   :  { %3116 = vmatprep.mubr.msk.f32.mxu0 %vm129_vm1, %v120_v19 }
 0x371   :  { %3117 = vmatmul.mubr.msk.f32.gmra.mxu0 %vm129_vm1, %v121_v23 }
 0x372   :  { %3182 = vmatprep.mubr.msk.f32.mxu0 %vm346_vm8, %v650_v53 }
 0x375   :  { %3183 = vmatmul.mubr.msk.f32.vlgmr.msra.gmra.mxu0 %vm346_vm8, %v652_v54 }
 0x376   :  { %3197 = vmatpush3.msra.mxu0 %v3674_v10 }
 0x377   :  { %3198 = vmatprep.subr.mxu0 %v3681_v11 }
 0x378   :  { %3199 = vmatpush3.msra.mxu0 %v3681_v11 }
 0x379   :  { %3200 = vmatprep.subr.mxu0 %v3692_v13 }
 0x37a   :  { %3201 = vmatpush3.msra.mxu0 %v3692_v13 }
 0x37b   :  { %3202 = vmatprep.subr.mxu0 %v3703_v15 }
 0x37c   :  { %3203 = vmatpush3.msra.mxu0 %v3703_v15 }
 0x37d   :  { %3218 = vmatprep.subr.mxu0 %v3634_v0 }
 0x3ab   :  { %v3100_v6 = vpop.f32.mrf.mxu0 }
 0x3ad   :  { %v258_v26 = vpop.f32.mrf.mxu0 }
 0x3b3   :  { %v3913_v31 = vpop.f32.mrf.mxu0 }
 0x3b5   :  { %v3915_v32 = vpop.f32.mrf.mxu0 }
 0x411   :  { %v3162_v24 = vpop.f32.mrf.mxu1 }
 0x412   :  { %v808_v25 = vadd.f32 %v3162_v24, %v3100_v6 }
 0x413   :  { %v723_v27 = vpop.f32.mrf.mxu1 }
 0x414   :  { %v2849_v28 = vmul.f32 -1.442695, %v808_v25  ;;  %v807_v29 = vadd.f32 %v723_v27, %v258_v26 }
 0x416   :  { %3413 = vpow2.f32 %v2849_v28  ;;  %v2848_v30 = vmul.f32 -1.442695, %v807_v29 }
 0x418   :  { %3415 = vpow2.f32 %v2848_v30 }
 0x419   :  { %v3173_v58 = vpop.f32.mrf.mxu1 }
 0x41b   :  { %v798_v59 = vpop.f32.mrf.mxu1 }
 0x421   :  { %v3917_v33 = vpop.f32.mrf.mxu0 }
 0x423   :  { %v3414_v34 = vpop.eup %3413  ;;  %v3919_v35 = vpop.f32.mrf.mxu0 }
 0x424   :  { %v816_v40 = vadd.f32 1.0, %v3414_v34 }
 0x425   :  { %v3416_v37 = vpop.eup %3415  ;;  %v3921_v39 = vpop.f32.mrf.mxu0 }
 0x426   :  { %v815_v42 = vadd.f32 1.0, %v3416_v37  ;;  %3417 = vrcp.f32 %v816_v40 }
 0x427   :  { %v3923_v41 = vpop.f32.mrf.mxu0 }
 0x428   :  { %3419 = vrcp.f32 %v815_v42 }
 0x429   :  { %v3925_v43 = vpop.f32.mrf.mxu0 }
 0x42b   :  { %v3927_v45 = vpop.f32.mrf.mxu0 }
 0x42d   :  { %v3929_v46 = vpop.f32.mrf.mxu0 }
 0x42f   :  { %v3931_v47 = vpop.f32.mrf.mxu0 }
 0x431   :  { %v3933_v48 = vpop.f32.mrf.mxu0 }
 0x433   :  { %v3935_v49 = vpop.f32.mrf.mxu0  ;;  %v3418_v52 = vpop.eup %3417 }
 0x435   :  { %v3184_v50 = vpop.f32.mrf.mxu0  ;;  %v3420_v56 = vpop.eup %3419 }
 0x436   :  { %v915_v51 = vadd.f32 %v3184_v50, %v3780_v44 }
 0x437   :  { %v909_v53 = vpop.f32.mrf.mxu0 }
 0x438   :  { %v919_v54 = vmul.f32 %v3418_v52, %v915_v51  ;;  %v910_v55 = vadd.f32 %v3780_v44, %v909_v53 }
 0x43a   :  { %v918_v57 = vmul.f32 %v3420_v56, %v910_v55  ;;  %924 = vrot.lane.b32.xlu1 %v919_v54, %s3591_s17 }
 0x43c   :  { %922 = vrot.lane.b32.xlu0 %v918_v57, %s3591_s17 }
 0x43e   :  { %825 = vrot.lane.b32.xlu1 %v3173_v58, %s3590_s14 }
 0x440   :  { %823 = vrot.lane.b32.xlu0 %v798_v59, %s3590_s14 }
 0x4ac   :  { %v925_v60 = vpop.permute.xlu1 %924 }
 0x4ad   :  { %v929_v61 = vadd.f32 %v3100_v6, %v925_v60 }
 0x4ae   :  { %v923_v62 = vpop.permute.xlu0 %922 }
 0x4af   :  { %3421 = vtanh.f32 %v929_v61  ;;  %v928_v63 = vadd.f32 %v923_v62, %v258_v26 }
 0x4b0   :  { %v826_v9 = vpop.permute.xlu1 %825 }
 0x4b1   :  { %3423 = vtanh.f32 %v928_v63  ;;  %v830_v14 = vadd.f32 %v3100_v6, %v826_v9 }
 0x4b2   :  { %v824_v12 = vpop.permute.xlu0 %823 }
 0x4b3   :  { %v829_v16 = vadd.f32 %v824_v12, %v258_v26  ;;  %v2851_v17 = vmul.f32 -1.442695, %v830_v14 }
 0x4b5   :  { %v2850_v19 = vmul.f32 -1.442695, %v829_v16  ;;  %3425 = vpow2.f32 %v2851_v17 }
 0x4b7   :  { %3427 = vpow2.f32 %v2850_v19 }
 0x4bc   :  { %v3422_v1 = vpop.eup %3421 }
 0x4bd   :  { %v933_v3 = vsub.f32 %v3822_v38, %v3422_v1 }
 0x4be   :  { %v3424_v5 = vpop.eup %3423 }
 0x4bf   :  { %938 = vrot.lane.b32.xlu1 %v933_v3, %s3592_s18  ;;  %v932_v7 = vsub.f32 %v3818_v36, %v3424_v5 }
 0x4c1   :  { %936 = vrot.lane.b32.xlu0 %v932_v7, %s3592_s18 }
 0x4c2   :  { %v3426_v23 = vpop.eup %3425 }
 0x4c3   :  { %v838_v25 = vadd.f32 1.0, %v3426_v23 }
 0x4c4   :  { %v3428_v24 = vpop.eup %3427 }
 0x4c5   :  { %v837_v27 = vadd.f32 1.0, %v3428_v24  ;;  %3429 = vrcp.f32 %v838_v25 }
 0x4c7   :  { %3431 = vrcp.f32 %v837_v27 }
 0x4d2   :  { %v3430_v38 = vpop.eup %3429 }
 0x4d4   :  { %v3432_v36 = vpop.eup %3431 }
 0x531   :  { %v939_v28 = vpop.permute.xlu1 %938 }
 0x532   :  { %v943_v29 = vmul.f32 %v3430_v38, %v939_v28 }
 0x533   :  { %v937_v30 = vpop.permute.xlu0 %936 }
 0x534   :  { %v942_v34 = vmul.f32 %v3432_v36, %v937_v30  ;;  %948 = vrot.lane.b32.xlu1 %v943_v29, %s3590_s14 }
 0x536   :  { %946 = vrot.lane.b32.xlu0 %v942_v34, %s3590_s14 }
 0x5a6   :  { %v949_v6 = vpop.permute.xlu1 %948 }
 0x5a7   :  { %v3949_v26 = vadd.f32 %v3422_v1, %v949_v6 }
 0x5a8   :  { %v947_v37 = vpop.permute.xlu0 %946 }
 0x5a9   :  { %v3951_v40 = vadd.f32 %v3424_v5, %v947_v37  ;;  %958 = vrot.lane.b32.xlu1 %v3949_v26, %s3591_s17 }
 0x5ab   :  { %956 = vrot.lane.b32.xlu0 %v3951_v40, %s3591_s17 }
 0x61b   :  { %v959_v50 = vpop.permute.xlu1 %958 }
 0x61d   :  { %v957_v42 = vpop.permute.xlu0 %956 }
 0x61e   :  { %3193 = vmatprep.mubr.msk.f32.mxu1 %vm346_vm8, %v957_v42  ;;  %3204 = vmatprep.mubr.msk.f32.mxu0 %vm346_vm8, %v957_v42 }
 0x61f   :  { %3194 = vmatmul.mubr.msk.f32.vlgmr.msra.gmra.mxu1 %vm346_vm8, %v959_v50  ;;  %3205 = vmatmul.mubr.msk.f32.vlgmr.msra.gmra.mxu0 %vm346_vm8, %v959_v50 }
 0x620   :  { %3208 = vmatpush3.msra.mxu1 %v3717_v18  ;;  %3215 = vmatprep.mubr.msk.f32.mxu1 %vm346_vm8, %v957_v42 }
 0x621   :  { %3209 = vmatprep.subr.mxu1 %v3727_v20  ;;  %3219 = vmatpush3.msra.mxu0 %v3634_v0 }
 0x622   :  { %3210 = vmatpush3.msra.mxu1 %v3727_v20  ;;  %3220 = vmatprep.subr.mxu0 %v3642_v2 }
 0x623   :  { %3211 = vmatprep.subr.mxu1 %v3734_v21  ;;  %3221 = vmatpush3.msra.mxu0 %v3642_v2 }
 0x624   :  { %3212 = vmatpush3.msra.mxu1 %v3734_v21  ;;  %3222 = vmatprep.subr.mxu0 %v3650_v4 }
 0x625   :  { %3213 = vmatprep.subr.mxu1 %v3741_v22  ;;  %3223 = vmatpush3.msra.mxu0 %v3650_v4 }
 0x626   :  { %3214 = vmatpush3.msra.mxu1 %v3741_v22  ;;  %3224 = vmatprep.subr.mxu0 %v3664_v8 }
 0x627   :  { %3216 = vmatmul.mubr.msk.f32.vlgmr.msra.gmra.mxu1 %vm346_vm8, %v959_v50  ;;  %3229 = vmatprep.subr.mxu1 %v3674_v10 }
 0x628   :  { %3230 = vmatpush3.msra.mxu1 %v3674_v10  ;;  %3225 = vmatpush3.msra.mxu0 %v3664_v8 }
 0x629   :  { %3231 = vmatprep.subr.mxu1 %v3681_v11  ;;  %3240 = vmatprep.subr.mxu0 %v3717_v18 }
 0x62a   :  { %3232 = vmatpush3.msra.mxu1 %v3681_v11 }
 0x62b   :  { %3233 = vmatprep.subr.mxu1 %v3692_v13 }
 0x62c   :  { %3234 = vmatpush3.msra.mxu1 %v3692_v13 }
 0x62d   :  { %3235 = vmatprep.subr.mxu1 %v3703_v15 }
 0x62e   :  { %3236 = vmatpush3.msra.mxu1 %v3703_v15 }
 0x62f   :  { %3251 = vmatprep.subr.mxu1 %v3634_v0 }
 0x6df   :  { %v3195_v51 = vpop.f32.mrf.mxu1  ;;  %v3206_v12 = vpop.f32.mrf.mxu0 }
 0x6e0   :  { %v1115_v52 = vadd.f32 %v3195_v51, %v3913_v31 }
 0x6e1   :  { %v1030_v53 = vpop.f32.mrf.mxu1  ;;  %v1105_v14 = vpop.f32.mrf.mxu0 }
 0x6e2   :  { %v2859_v54 = vmul.f32 -1.442695, %v1115_v52  ;;  %v1114_v55 = vadd.f32 %v1030_v53, %v3915_v32 }
 0x6e4   :  { %3433 = vpow2.f32 %v2859_v54  ;;  %v2858_v56 = vmul.f32 -1.442695, %v1114_v55 }
 0x6e6   :  { %3435 = vpow2.f32 %v2858_v56 }
 0x6e7   :  { %v3217_v61 = vpop.f32.mrf.mxu1 }
 0x6e8   :  { %v1222_v63 = vadd.f32 %v3217_v61, %v3780_v44 }
 0x6e9   :  { %v1216_v62 = vpop.f32.mrf.mxu1 }
 0x6ea   :  { %v1217_v5 = vadd.f32 %v3780_v44, %v1216_v62 }
 0x6f1   :  { %v3434_v57 = vpop.eup %3433 }
 0x6f2   :  { %v1123_v58 = vadd.f32 1.0, %v3434_v57 }
 0x6f3   :  { %v3436_v59 = vpop.eup %3435 }
 0x6f4   :  { %3437 = vrcp.f32 %v1123_v58  ;;  %v1122_v60 = vadd.f32 1.0, %v3436_v59 }
 0x6f6   :  { %3439 = vrcp.f32 %v1122_v60 }
 0x701   :  { %v3438_v1 = vpop.eup %3437 }
 0x702   :  { %v1226_v3 = vmul.f32 %v3438_v1, %v1222_v63 }
 0x703   :  { %v3440_v7 = vpop.eup %3439 }
 0x704   :  { %v1225_v9 = vmul.f32 %v3440_v7, %v1217_v5  ;;  %1231 = vrot.lane.b32.xlu1 %v1226_v3, %s3591_s17 }
 0x706   :  { %1229 = vrot.lane.b32.xlu0 %v1225_v9, %s3591_s17 }
 0x708   :  { %1132 = vrot.lane.b32.xlu1 %v3206_v12, %s3590_s14 }
 0x70a   :  { %1130 = vrot.lane.b32.xlu0 %v1105_v14, %s3590_s14 }
 0x776   :  { %v1232_v16 = vpop.permute.xlu1 %1231 }
 0x777   :  { %v1236_v17 = vadd.f32 %v3913_v31, %v1232_v16 }
 0x778   :  { %v1230_v19 = vpop.permute.xlu0 %1229 }
 0x779   :  { %3441 = vtanh.f32 %v1236_v17  ;;  %v1235_v23 = vadd.f32 %v1230_v19, %v3915_v32 }
 0x77a   :  { %v1133_v28 = vpop.permute.xlu1 %1132 }
 0x77b   :  { %3443 = vtanh.f32 %v1235_v23  ;;  %v1137_v36 = vadd.f32 %v3913_v31, %v1133_v28 }
 0x77c   :  { %v1131_v29 = vpop.permute.xlu0 %1130 }
 0x77d   :  { %v1136_v30 = vadd.f32 %v1131_v29, %v3915_v32  ;;  %v2861_v34 = vmul.f32 -1.442695, %v1137_v36 }
 0x77f   :  { %v2860_v6 = vmul.f32 -1.442695, %v1136_v30  ;;  %3445 = vpow2.f32 %v2861_v34 }
 0x781   :  { %3447 = vpow2.f32 %v2860_v6 }
 0x786   :  { %v3442_v24 = vpop.eup %3441 }
 0x787   :  { %v1240_v25 = vsub.f32 %v3949_v26, %v3442_v24 }
 0x788   :  { %v3444_v27 = vpop.eup %3443 }
 0x789   :  { %1245 = vrot.lane.b32.xlu1 %v1240_v25, %s3592_s18  ;;  %v1239_v38 = vsub.f32 %v3951_v40, %v3444_v27 }
 0x78b   :  { %1243 = vrot.lane.b32.xlu0 %v1239_v38, %s3592_s18 }
 0x78c   :  { %v3446_v37 = vpop.eup %3445 }
 0x78d   :  { %v1145_v26 = vadd.f32 1.0, %v3446_v37 }
 0x78e   :  { %v3448_v42 = vpop.eup %3447 }
 0x78f   :  { %v1144_v50 = vadd.f32 1.0, %v3448_v42  ;;  %3449 = vrcp.f32 %v1145_v26 }
 0x791   :  { %3451 = vrcp.f32 %v1144_v50 }
 0x79c   :  { %v3450_v51 = vpop.eup %3449 }
 0x79e   :  { %v3452_v53 = vpop.eup %3451 }
 0x7fb   :  { %v1246_v40 = vpop.permute.xlu1 %1245 }
 0x7fc   :  { %v1250_v52 = vmul.f32 %v3450_v51, %v1246_v40 }
 0x7fd   :  { %v1244_v54 = vpop.permute.xlu0 %1243 }
 0x7fe   :  { %v1249_v55 = vmul.f32 %v3452_v53, %v1244_v54  ;;  %1255 = vrot.lane.b32.xlu1 %v1250_v52, %s3590_s14 }
 0x800   :  { %1253 = vrot.lane.b32.xlu0 %v1249_v55, %s3590_s14 }
 0x870   :  { %v1256_v31 = vpop.permute.xlu1 %1255 }
 0x871   :  { %v4005_v32 = vadd.f32 %v3442_v24, %v1256_v31 }
 0x872   :  { %v1254_v56 = vpop.permute.xlu0 %1253 }
 0x873   :  { %v4007_v57 = vadd.f32 %v3444_v27, %v1254_v56  ;;  %1265 = vrot.lane.b32.xlu1 %v4005_v32, %s3591_s17  ;;  %v4083_v56 = vld [vmem:[%s4335_s4 + $0x10] sm:$0xff] }
 0x875   :  { %1263 = vrot.lane.b32.xlu0 %v4007_v57, %s3591_s17 }
 0x8e5   :  { %v1266_v59 = vpop.permute.xlu1 %1265 }
 0x8e7   :  { %v1264_v58 = vpop.permute.xlu0 %1263 }
 0x8e8   :  { %3226 = vmatprep.mubr.msk.f32.mxu0 %vm346_vm8, %v1264_v58  ;;  %3237 = vmatprep.mubr.msk.f32.mxu1 %vm346_vm8, %v1264_v58 }
 0x8e9   :  { %3227 = vmatmul.mubr.msk.f32.vlgmr.msra.gmra.mxu0 %vm346_vm8, %v1266_v59  ;;  %3238 = vmatmul.mubr.msk.f32.vlgmr.msra.gmra.mxu1 %vm346_vm8, %v1266_v59 }
 0x8ea   :  { %3241 = vmatpush3.msra.mxu0 %v3717_v18  ;;  %3248 = vmatprep.mubr.msk.f32.mxu0 %vm346_vm8, %v1264_v58  ;;  %v4096_v58 = vld [vmem:[%s4333_s2 + $0x10] sm:$0xff] }
 0x8eb   :  { %3242 = vmatprep.subr.mxu0 %v3727_v20  ;;  %3252 = vmatpush3.msra.mxu1 %v3634_v0 }
 0x8ec   :  { %3243 = vmatpush3.msra.mxu0 %v3727_v20  ;;  %3253 = vmatprep.subr.mxu1 %v3642_v2 }
 0x8ed   :  { %3244 = vmatprep.subr.mxu0 %v3734_v21  ;;  %3254 = vmatpush3.msra.mxu1 %v3642_v2 }
 0x8ee   :  { %3245 = vmatpush3.msra.mxu0 %v3734_v21  ;;  %3255 = vmatprep.subr.mxu1 %v3650_v4 }
 0x8ef   :  { %3246 = vmatprep.subr.mxu0 %v3741_v22  ;;  %3256 = vmatpush3.msra.mxu1 %v3650_v4 }
 0x8f0   :  { %3247 = vmatpush3.msra.mxu0 %v3741_v22  ;;  %3257 = vmatprep.subr.mxu1 %v3664_v8 }
 0x8f1   :  { %3249 = vmatmul.mubr.msk.f32.vlgmr.msra.gmra.mxu0 %vm346_vm8, %v1266_v59  ;;  %3262 = vmatprep.subr.mxu0 %v3674_v10  ;;  %v4102_v59 = vld [vmem:[%s4335_s4 + $0x8] sm:$0xff] }
 0x8f2   :  { %3263 = vmatpush3.msra.mxu0 %v3674_v10  ;;  %3258 = vmatpush3.msra.mxu1 %v3664_v8 }
 0x8f3   :  { %3264 = vmatprep.subr.mxu0 %v3681_v11  ;;  %3273 = vmatprep.subr.mxu1 %v3717_v18 }
 0x8f4   :  { %3265 = vmatpush3.msra.mxu0 %v3681_v11 }
 0x8f5   :  { %3266 = vmatprep.subr.mxu0 %v3692_v13 }
 0x8f6   :  { %3267 = vmatpush3.msra.mxu0 %v3692_v13 }
 0x8f7   :  { %3268 = vmatprep.subr.mxu0 %v3703_v15 }
 0x8f8   :  { %3269 = vmatpush3.msra.mxu0 %v3703_v15 }
 0x8f9   :  { %3284 = vmatprep.subr.mxu0 %v3634_v0 }
 0x9a9   :  { %v3228_v2 = vpop.f32.mrf.mxu0  ;;  %v3239_v5 = vpop.f32.mrf.mxu1 }
 0x9aa   :  { %v1422_v4 = vadd.f32 %v3228_v2, %v3917_v33  ;;  %v4110_v2 = vld [vmem:[%s4333_s2 + $0x8] sm:$0xff] }
 0x9ab   :  { %v1337_v8 = vpop.f32.mrf.mxu0  ;;  %v1412_v7 = vpop.f32.mrf.mxu1 }
 0x9ac   :  { %v2869_v10 = vmul.f32 -1.442695, %v1422_v4  ;;  %v1421_v20 = vadd.f32 %v1337_v8, %v3919_v35  ;;  %v4116_v4 = vld [vmem:[%s4335_s4] sm:$0xff] }
 0x9ad   :  { %v4124_v8 = vld [vmem:[%s4333_s2] sm:$0xff] }
 0x9ae   :  { %3453 = vpow2.f32 %v2869_v10  ;;  %v2868_v18 = vmul.f32 -1.442695, %v1421_v20  ;;  %v4131_v10 = vld [vmem:[%s4334_s3 + $0x18] sm:$0xff]  ;;  %v4139_v20 = vld [vmem:[%s4334_s3 + $0x10] sm:$0xff] }
 0x9b0   :  { %3455 = vpow2.f32 %v2868_v18  ;;  %v4147_v18 = vld [vmem:[%s4334_s3 + $0x8] sm:$0xff] }
 0x9b1   :  { %v3250_v60 = vpop.f32.mrf.mxu0 }
 0x9b2   :  { %v1529_v0 = vadd.f32 %v3250_v60, %v3780_v44 }
 0x9b3   :  { %v1523_v15 = vpop.f32.mrf.mxu0 }
 0x9b4   :  { %v1524_v63 = vadd.f32 %v3780_v44, %v1523_v15 }
 0x9bb   :  { %v3454_v11 = vpop.eup %3453 }
 0x9bc   :  { %v1430_v21 = vadd.f32 1.0, %v3454_v11  ;;  %v4154_v11 = vld [vmem:[%s4334_s3] sm:$0xff] }
 0x9bd   :  { %v3456_v22 = vpop.eup %3455 }
 0x9be   :  { %3457 = vrcp.f32 %v1430_v21  ;;  %v1429_v13 = vadd.f32 1.0, %v3456_v22 }
 0x9c0   :  { %3459 = vrcp.f32 %v1429_v13 }
 0x9cb   :  { %v3458_v61 = vpop.eup %3457 }
 0x9cc   :  { %v1533_v62 = vmul.f32 %v3458_v61, %v1529_v0 }
 0x9cd   :  { %v3460_v1 = vpop.eup %3459 }
 0x9ce   :  { %v1532_v3 = vmul.f32 %v3460_v1, %v1524_v63  ;;  %1538 = vrot.lane.b32.xlu1 %v1533_v62, %s3591_s17 }
 0x9d0   :  { %1536 = vrot.lane.b32.xlu0 %v1532_v3, %s3591_s17 }
 0x9d2   :  { %1439 = vrot.lane.b32.xlu1 %v3239_v5, %s3590_s14 }
 0x9d4   :  { %1437 = vrot.lane.b32.xlu0 %v1412_v7, %s3590_s14 }
 0xa40   :  { %v1539_v9 = vpop.permute.xlu1 %1538 }
 0xa41   :  { %v1543_v12 = vadd.f32 %v3917_v33, %v1539_v9 }
 0xa42   :  { %v1537_v14 = vpop.permute.xlu0 %1536 }
 0xa43   :  { %3461 = vtanh.f32 %v1543_v12  ;;  %v1542_v16 = vadd.f32 %v1537_v14, %v3919_v35 }
 0xa44   :  { %v1440_v25 = vpop.permute.xlu1 %1439 }
 0xa45   :  { %3463 = vtanh.f32 %v1542_v16  ;;  %v1444_v38 = vadd.f32 %v3917_v33, %v1440_v25 }
 0xa46   :  { %v1438_v27 = vpop.permute.xlu0 %1437 }
 0xa47   :  { %v1443_v28 = vadd.f32 %v1438_v27, %v3919_v35  ;;  %v2871_v29 = vmul.f32 -1.442695, %v1444_v38 }
 0xa49   :  { %v2870_v36 = vmul.f32 -1.442695, %v1443_v28  ;;  %3465 = vpow2.f32 %v2871_v29 }
 0xa4b   :  { %3467 = vpow2.f32 %v2870_v36 }
 0xa50   :  { %v3462_v17 = vpop.eup %3461 }
 0xa51   :  { %v1547_v19 = vsub.f32 %v4005_v32, %v3462_v17  ;;  %v4076_v32 = vld [vmem:[%s4335_s4 + $0x18] sm:$0xff] }
 0xa52   :  { %v3464_v23 = vpop.eup %3463 }
 0xa53   :  { %1552 = vrot.lane.b32.xlu1 %v1547_v19, %s3592_s18  ;;  %v1546_v24 = vsub.f32 %v4007_v57, %v3464_v23  ;;  %v4089_v57 = vld [vmem:[%s4333_s2 + $0x18] sm:$0xff] }
 0xa55   :  { %1550 = vrot.lane.b32.xlu0 %v1546_v24, %s3592_s18 }
 0xa56   :  { %v3466_v30 = vpop.eup %3465 }
 0xa57   :  { %v1452_v6 = vadd.f32 1.0, %v3466_v30 }
 0xa58   :  { %v3468_v34 = vpop.eup %3467 }
 0xa59   :  { %v1451_v37 = vadd.f32 1.0, %v3468_v34  ;;  %3469 = vrcp.f32 %v1452_v6 }
 0xa5b   :  { %3471 = vrcp.f32 %v1451_v37 }
 0xa66   :  { %v3470_v42 = vpop.eup %3469 }
 0xa68   :  { %v3472_v51 = vpop.eup %3471 }
 0xac5   :  { %v1553_v26 = vpop.permute.xlu1 %1552 }
 0xac6   :  { %v1557_v50 = vmul.f32 %v3470_v42, %v1553_v26 }
 0xac7   :  { %v1551_v40 = vpop.permute.xlu0 %1550 }
 0xac8   :  { %v1556_v52 = vmul.f32 %v3472_v51, %v1551_v40  ;;  %1562 = vrot.lane.b32.xlu1 %v1557_v50, %s3590_s14 }
 0xaca   :  { %1560 = vrot.lane.b32.xlu0 %v1556_v52, %s3590_s14 }
 0xb3a   :  { %v1563_v33 = vpop.permute.xlu1 %1562 }
 0xb3b   :  { %v4061_v35 = vadd.f32 %v3462_v17, %v1563_v33 }
 0xb3c   :  { %v1561_v53 = vpop.permute.xlu0 %1560 }
 0xb3d   :  { %v4063_v54 = vadd.f32 %v3464_v23, %v1561_v53  ;;  %1572 = vrot.lane.b32.xlu1 %v4061_v35, %s3591_s17 }
 0xb3f   :  { %1570 = vrot.lane.b32.xlu0 %v4063_v54, %s3591_s17 }
 0xbaf   :  { %v1573_v31 = vpop.permute.xlu1 %1572 }
 0xbb1   :  { %v1571_v55 = vpop.permute.xlu0 %1570 }
 0xbb2   :  { %3259 = vmatprep.mubr.msk.f32.mxu1 %vm346_vm8, %v1571_v55  ;;  %3270 = vmatprep.mubr.msk.f32.mxu0 %vm346_vm8, %v1571_v55 }
 0xbb3   :  { %3260 = vmatmul.mubr.msk.f32.vlgmr.msra.gmra.mxu1 %vm346_vm8, %v1573_v31  ;;  %3271 = vmatmul.mubr.msk.f32.vlgmr.msra.gmra.mxu0 %vm346_vm8, %v1573_v31 }
 0xbb4   :  { %3274 = vmatpush3.msra.mxu1 %v4076_v32  ;;  %3281 = vmatprep.mubr.msk.f32.mxu1 %vm346_vm8, %v1571_v55 }
 0xbb5   :  { %3275 = vmatprep.subr.mxu1 %v4083_v56  ;;  %3285 = vmatpush3.msra.mxu0 %v4089_v57 }
 0xbb6   :  { %3276 = vmatpush3.msra.mxu1 %v4083_v56  ;;  %3286 = vmatprep.subr.mxu0 %v4096_v58 }
 0xbb7   :  { %3277 = vmatprep.subr.mxu1 %v4102_v59  ;;  %3287 = vmatpush3.msra.mxu0 %v4096_v58 }
 0xbb8   :  { %3278 = vmatpush3.msra.mxu1 %v4102_v59  ;;  %3288 = vmatprep.subr.mxu0 %v4110_v2 }
 0xbb9   :  { %3279 = vmatprep.subr.mxu1 %v4116_v4  ;;  %3289 = vmatpush3.msra.mxu0 %v4110_v2 }
 0xbba   :  { %3280 = vmatpush3.msra.mxu1 %v4116_v4  ;;  %3290 = vmatprep.subr.mxu0 %v4124_v8 }
 0xbbb   :  { %3282 = vmatmul.mubr.msk.f32.vlgmr.msra.gmra.mxu1 %vm346_vm8, %v1573_v31  ;;  %3295 = vmatprep.subr.mxu1 %v4131_v10 }
 0xbbc   :  { %3296 = vmatpush3.msra.mxu1 %v4131_v10  ;;  %3291 = vmatpush3.msra.mxu0 %v4124_v8 }
 0xbbd   :  { %3297 = vmatprep.subr.mxu1 %v4139_v20  ;;  %3306 = vmatprep.subr.mxu0 %v4076_v32 }
 0xbbe   :  { %3298 = vmatpush3.msra.mxu1 %v4139_v20 }
 0xbbf   :  { %3299 = vmatprep.subr.mxu1 %v4147_v18 }
 0xbc0   :  { %3300 = vmatpush3.msra.mxu1 %v4147_v18 }
 0xbc1   :  { %3301 = vmatprep.subr.mxu1 %v4154_v11 }
 0xbc2   :  { %3302 = vmatpush3.msra.mxu1 %v4154_v11 }
 0xbc3   :  { %3317 = vmatprep.subr.mxu1 %v4089_v57 }
 0xc73   :  { %v3261_v21 = vpop.f32.mrf.mxu1  ;;  %v3272_v19 = vpop.f32.mrf.mxu0 }
 0xc74   :  { %v1729_v22 = vadd.f32 %v3261_v21, %v3921_v39 }
 0xc75   :  { %v1644_v13 = vpop.f32.mrf.mxu1  ;;  %v1719_v23 = vpop.f32.mrf.mxu0 }
 0xc76   :  { %v2879_v60 = vmul.f32 -1.442695, %v1729_v22  ;;  %v1728_v15 = vadd.f32 %v1644_v13, %v3923_v41 }
 0xc78   :  { %3473 = vpow2.f32 %v2879_v60  ;;  %v2878_v0 = vmul.f32 -1.442695, %v1728_v15 }
 0xc7a   :  { %3475 = vpow2.f32 %v2878_v0 }
 0xc7b   :  { %v3283_v3 = vpop.f32.mrf.mxu1 }
 0xc7c   :  { %v1836_v7 = vadd.f32 %v3283_v3, %v3780_v44 }
 0xc7d   :  { %v1830_v5 = vpop.f32.mrf.mxu1 }
 0xc7e   :  { %v1831_v14 = vadd.f32 %v3780_v44, %v1830_v5 }
 0xc85   :  { %v3474_v61 = vpop.eup %3473 }
 0xc86   :  { %v1737_v62 = vadd.f32 1.0, %v3474_v61 }
 0xc87   :  { %v3476_v63 = vpop.eup %3475 }
 0xc88   :  { %3477 = vrcp.f32 %v1737_v62  ;;  %v1736_v1 = vadd.f32 1.0, %v3476_v63 }
 0xc8a   :  { %3479 = vrcp.f32 %v1736_v1 }
 0xc95   :  { %v3478_v9 = vpop.eup %3477 }
 0xc96   :  { %v1840_v12 = vmul.f32 %v3478_v9, %v1836_v7 }
 0xc97   :  { %v3480_v16 = vpop.eup %3479 }
 0xc98   :  { %v1839_v17 = vmul.f32 %v3480_v16, %v1831_v14  ;;  %1845 = vrot.lane.b32.xlu1 %v1840_v12, %s3591_s17  ;;  %v4220_v16 = vld [vmem:[%s4336_s5] ss:$0 sm:$0xff]  ;;  %s3593_s5 = smov [#allocation2]  }
 0xc9a   :  { %1843 = vrot.lane.b32.xlu0 %v1839_v17, %s3591_s17 }
 0xc9c   :  { %1746 = vrot.lane.b32.xlu1 %v3272_v19, %s3590_s14 }
 0xc9e   :  { %1744 = vrot.lane.b32.xlu0 %v1719_v23, %s3590_s14 }
 0xd0a   :  { %v1846_v24 = vpop.permute.xlu1 %1845 }
 0xd0b   :  { %v1850_v25 = vadd.f32 %v3921_v39, %v1846_v24 }
 0xd0c   :  { %v1844_v27 = vpop.permute.xlu0 %1843 }
 0xd0d   :  { %3481 = vtanh.f32 %v1850_v25  ;;  %v1849_v38 = vadd.f32 %v1844_v27, %v3923_v41 }
 0xd0e   :  { %v1747_v30 = vpop.permute.xlu1 %1746 }
 0xd0f   :  { %3483 = vtanh.f32 %v1849_v38  ;;  %v1751_v6 = vadd.f32 %v3921_v39, %v1747_v30 }
 0xd10   :  { %v1745_v34 = vpop.permute.xlu0 %1744 }
 0xd11   :  { %v1750_v37 = vadd.f32 %v1745_v34, %v3923_v41  ;;  %v2881_v42 = vmul.f32 -1.442695, %v1751_v6 }
 0xd13   :  { %v2880_v26 = vmul.f32 -1.442695, %v1750_v37  ;;  %3485 = vpow2.f32 %v2881_v42 }
 0xd15   :  { %3487 = vpow2.f32 %v2880_v26 }
 0xd1a   :  { %v3482_v44 = vpop.eup %3481 }
 0xd1b   :  { %v1854_v28 = vsub.f32 %v4061_v35, %v3482_v44 }
 0xd1c   :  { %v3484_v29 = vpop.eup %3483 }
 0xd1d   :  { %1859 = vrot.lane.b32.xlu1 %v1854_v28, %s3592_s18  ;;  %v1853_v36 = vsub.f32 %v4063_v54, %v3484_v29 }
 0xd1f   :  { %1857 = vrot.lane.b32.xlu0 %v1853_v36, %s3592_s18 }
 0xd20   :  { %v3486_v50 = vpop.eup %3485 }
 0xd21   :  { %v1759_v40 = vadd.f32 1.0, %v3486_v50 }
 0xd22   :  { %v3488_v51 = vpop.eup %3487 }
 0xd23   :  { %v1758_v52 = vadd.f32 1.0, %v3488_v51  ;;  %3489 = vrcp.f32 %v1759_v40 }
 0xd25   :  { %3491 = vrcp.f32 %v1758_v52 }
 0xd30   :  { %v3490_v33 = vpop.eup %3489 }
 0xd32   :  { %v3492_v54 = vpop.eup %3491 }
 0xd8f   :  { %v1860_v35 = vpop.permute.xlu1 %1859 }
 0xd90   :  { %v1864_v53 = vmul.f32 %v3490_v33, %v1860_v35 }
 0xd91   :  { %v1858_v55 = vpop.permute.xlu0 %1857 }
 0xd92   :  { %v1863_v31 = vmul.f32 %v3492_v54, %v1858_v55  ;;  %1869 = vrot.lane.b32.xlu1 %v1864_v53, %s3590_s14 }
 0xd94   :  { %1867 = vrot.lane.b32.xlu0 %v1863_v31, %s3590_s14 }
 0xe04   :  { %v1870_v39 = vpop.permute.xlu1 %1869 }
 0xe05   :  { %v4177_v41 = vadd.f32 %v3482_v44, %v1870_v39 }
 0xe06   :  { %v1868_v21 = vpop.permute.xlu0 %1867 }
 0xe07   :  { %v4179_v22 = vadd.f32 %v3484_v29, %v1868_v21  ;;  %1879 = vrot.lane.b32.xlu1 %v4177_v41, %s3591_s17 }
 0xe09   :  { %1877 = vrot.lane.b32.xlu0 %v4179_v22, %s3591_s17 }
 0xe79   :  { %v1880_v60 = vpop.permute.xlu1 %1879 }
 0xe7b   :  { %v1878_v13 = vpop.permute.xlu0 %1877 }
 0xe7c   :  { %3292 = vmatprep.mubr.msk.f32.mxu0 %vm346_vm8, %v1878_v13  ;;  %3303 = vmatprep.mubr.msk.f32.mxu1 %vm346_vm8, %v1878_v13 }
 0xe7d   :  { %3293 = vmatmul.mubr.msk.f32.vlgmr.msra.gmra.mxu0 %vm346_vm8, %v1880_v60  ;;  %3304 = vmatmul.mubr.msk.f32.vlgmr.msra.gmra.mxu1 %vm346_vm8, %v1880_v60 }
 0xe7e   :  { %3307 = vmatpush3.msra.mxu0 %v4076_v32  ;;  %3314 = vmatprep.mubr.msk.f32.mxu0 %vm346_vm8, %v1878_v13 }
 0xe7f   :  { %3308 = vmatprep.subr.mxu0 %v4083_v56  ;;  %3318 = vmatpush3.msra.mxu1 %v4089_v57 }
 0xe80   :  { %3309 = vmatpush3.msra.mxu0 %v4083_v56  ;;  %3319 = vmatprep.subr.mxu1 %v4096_v58 }
 0xe81   :  { %3310 = vmatprep.subr.mxu0 %v4102_v59  ;;  %3320 = vmatpush3.msra.mxu1 %v4096_v58 }
 0xe82   :  { %3311 = vmatpush3.msra.mxu0 %v4102_v59  ;;  %3321 = vmatprep.subr.mxu1 %v4110_v2 }
 0xe83   :  { %3312 = vmatprep.subr.mxu0 %v4116_v4  ;;  %3322 = vmatpush3.msra.mxu1 %v4110_v2 }
 0xe84   :  { %3313 = vmatpush3.msra.mxu0 %v4116_v4  ;;  %3323 = vmatprep.subr.mxu1 %v4124_v8 }
 0xe85   :  { %3315 = vmatmul.mubr.msk.f32.vlgmr.msra.gmra.mxu0 %vm346_vm8, %v1880_v60  ;;  %3328 = vmatprep.subr.mxu0 %v4131_v10 }
 0xe86   :  { %3329 = vmatpush3.msra.mxu0 %v4131_v10  ;;  %3324 = vmatpush3.msra.mxu1 %v4124_v8 }
 0xe87   :  { %3330 = vmatprep.subr.mxu0 %v4139_v20  ;;  %3339 = vmatprep.subr.mxu1 %v4076_v32 }
 0xe88   :  { %3331 = vmatpush3.msra.mxu0 %v4139_v20 }
 0xe89   :  { %3332 = vmatprep.subr.mxu0 %v4147_v18 }
 0xe8a   :  { %3333 = vmatpush3.msra.mxu0 %v4147_v18 }
 0xe8b   :  { %3334 = vmatprep.subr.mxu0 %v4154_v11 }
 0xe8c   :  { %3335 = vmatpush3.msra.mxu0 %v4154_v11 }
 0xe8d   :  { %3350 = vmatprep.subr.mxu0 %v4089_v57 }
 0xf3d   :  { %v3294_v15 = vpop.f32.mrf.mxu0  ;;  %v3305_v38 = vpop.f32.mrf.mxu1 }
 0xf3e   :  { %v2036_v0 = vadd.f32 %v3294_v15, %v3925_v43 }
 0xf3f   :  { %v1951_v61 = vpop.f32.mrf.mxu0  ;;  %v2026_v44 = vpop.f32.mrf.mxu1 }
 0xf40   :  { %v2889_v62 = vmul.f32 -1.442695, %v2036_v0  ;;  %v2035_v63 = vadd.f32 %v1951_v61, %v3927_v45 }
 0xf42   :  { %3493 = vpow2.f32 %v2889_v62  ;;  %v2888_v1 = vmul.f32 -1.442695, %v2035_v63 }
 0xf44   :  { %3495 = vpow2.f32 %v2888_v1 }
 0xf45   :  { %v3316_v12 = vpop.f32.mrf.mxu0 }
 0xf46   :  { %v2143_v17 = vadd.f32 %v4220_v16, %v3316_v12 }
 0xf47   :  { %v2137_v14 = vpop.f32.mrf.mxu0 }
 0xf48   :  { %v2138_v24 = vadd.f32 %v4220_v16, %v2137_v14 }
 0xf4f   :  { %v3494_v3 = vpop.eup %3493 }
 0xf50   :  { %v2044_v5 = vadd.f32 1.0, %v3494_v3 }
 0xf51   :  { %v3496_v7 = vpop.eup %3495 }
 0xf52   :  { %3497 = vrcp.f32 %v2044_v5  ;;  %v2043_v9 = vadd.f32 1.0, %v3496_v7 }
 0xf54   :  { %3499 = vrcp.f32 %v2043_v9 }
 0xf5f   :  { %v3498_v19 = vpop.eup %3497 }
 0xf60   :  { %v2147_v23 = vmul.f32 %v3498_v19, %v2143_v17 }
 0xf61   :  { %v3500_v25 = vpop.eup %3499 }
 0xf62   :  { %v2146_v27 = vmul.f32 %v3500_v25, %v2138_v24  ;;  %2152 = vrot.lane.b32.xlu1 %v2147_v23, %s3591_s17 }
 0xf64   :  { %2150 = vrot.lane.b32.xlu0 %v2146_v27, %s3591_s17 }
 0xf66   :  { %2053 = vrot.lane.b32.xlu1 %v3305_v38, %s3590_s14 }
 0xf68   :  { %2051 = vrot.lane.b32.xlu0 %v2026_v44, %s3590_s14 }
 0xfd4   :  { %v2153_v28 = vpop.permute.xlu1 %2152 }
 0xfd5   :  { %v2157_v29 = vadd.f32 %v3925_v43, %v2153_v28 }
 0xfd6   :  { %v2151_v36 = vpop.permute.xlu0 %2150 }
 0xfd7   :  { %3501 = vtanh.f32 %v2157_v29  ;;  %v2156_v30 = vadd.f32 %v2151_v36, %v3927_v45 }
 0xfd8   :  { %v2054_v26 = vpop.permute.xlu1 %2053 }
 0xfd9   :  { %3503 = vtanh.f32 %v2156_v30  ;;  %v2058_v51 = vadd.f32 %v3925_v43, %v2054_v26 }
 0xfda   :  { %v2052_v50 = vpop.permute.xlu0 %2051 }
 0xfdb   :  { %v2057_v40 = vadd.f32 %v2052_v50, %v3927_v45  ;;  %v2891_v52 = vmul.f32 -1.442695, %v2058_v51 }
 0xfdd   :  { %v2890_v33 = vmul.f32 -1.442695, %v2057_v40  ;;  %3505 = vpow2.f32 %v2891_v52 }
 0xfdf   :  { %3507 = vpow2.f32 %v2890_v33 }
 0xfe4   :  { %v3502_v34 = vpop.eup %3501 }
 0xfe5   :  { %v2161_v6 = vsub.f32 %v4177_v41, %v3502_v34 }
 0xfe6   :  { %v3504_v37 = vpop.eup %3503 }
 0xfe7   :  { %2166 = vrot.lane.b32.xlu1 %v2161_v6, %s3592_s18  ;;  %v2160_v42 = vsub.f32 %v4179_v22, %v3504_v37 }
 0xfe9   :  { %2164 = vrot.lane.b32.xlu0 %v2160_v42, %s3592_s18 }
 0xfea   :  { %v3506_v35 = vpop.eup %3505 }
 0xfeb   :  { %v2066_v54 = vadd.f32 1.0, %v3506_v35 }
 0xfec   :  { %v3508_v53 = vpop.eup %3507 }
 0xfed   :  { %v2065_v55 = vadd.f32 1.0, %v3508_v53  ;;  %3509 = vrcp.f32 %v2066_v54 }
 0xfef   :  { %3511 = vrcp.f32 %v2065_v55 }
 0xffa   :  { %v3510_v31 = vpop.eup %3509 }
 0xffc   :  { %v3512_v21 = vpop.eup %3511 }
0x1059   :  { %v2167_v39 = vpop.permute.xlu1 %2166 }
0x105a   :  { %v2171_v41 = vmul.f32 %v3510_v31, %v2167_v39 }
0x105b   :  { %v2165_v22 = vpop.permute.xlu0 %2164 }
0x105c   :  { %v2170_v13 = vmul.f32 %v3512_v21, %v2165_v22  ;;  %2176 = vrot.lane.b32.xlu1 %v2171_v41, %s3590_s14 }
0x105e   :  { %2174 = vrot.lane.b32.xlu0 %v2170_v13, %s3590_s14 }
0x10ce   :  { %v2177_v43 = vpop.permute.xlu1 %2176 }
0x10cf   :  { %v4238_v45 = vadd.f32 %v3502_v34, %v2177_v43 }
0x10d0   :  { %v2175_v60 = vpop.permute.xlu0 %2174 }
0x10d1   :  { %v4240_v15 = vadd.f32 %v3504_v37, %v2175_v60  ;;  %2186 = vrot.lane.b32.xlu1 %v4238_v45, %s3591_s17 }
0x10d3   :  { %2184 = vrot.lane.b32.xlu0 %v4240_v15, %s3591_s17 }
0x1143   :  { %v2187_v61 = vpop.permute.xlu1 %2186 }
0x1145   :  { %v2185_v0 = vpop.permute.xlu0 %2184 }
0x1146   :  { %3325 = vmatprep.mubr.msk.f32.mxu1 %vm346_vm8, %v2185_v0  ;;  %3336 = vmatprep.mubr.msk.f32.mxu0 %vm346_vm8, %v2185_v0 }
0x1147   :  { %3326 = vmatmul.mubr.msk.f32.vlgmr.msra.gmra.mxu1 %vm346_vm8, %v2187_v61  ;;  %3337 = vmatmul.mubr.msk.f32.vlgmr.msra.gmra.mxu0 %vm346_vm8, %v2187_v61 }
0x1148   :  { %3340 = vmatpush3.msra.mxu1 %v4076_v32  ;;  %3347 = vmatprep.mubr.msk.f32.mxu1 %vm346_vm8, %v2185_v0 }
0x1149   :  { %3341 = vmatprep.subr.mxu1 %v4083_v56  ;;  %3351 = vmatpush3.msra.mxu0 %v4089_v57 }
0x114a   :  { %3342 = vmatpush3.msra.mxu1 %v4083_v56  ;;  %3352 = vmatprep.subr.mxu0 %v4096_v58 }
0x114b   :  { %3343 = vmatprep.subr.mxu1 %v4102_v59  ;;  %3353 = vmatpush3.msra.mxu0 %v4096_v58 }
0x114c   :  { %3344 = vmatpush3.msra.mxu1 %v4102_v59  ;;  %3354 = vmatprep.subr.mxu0 %v4110_v2 }
0x114d   :  { %3345 = vmatprep.subr.mxu1 %v4116_v4  ;;  %3355 = vmatpush3.msra.mxu0 %v4110_v2 }
0x114e   :  { %3346 = vmatpush3.msra.mxu1 %v4116_v4  ;;  %3356 = vmatprep.subr.mxu0 %v4124_v8 }
0x114f   :  { %3348 = vmatmul.mubr.msk.f32.vlgmr.msra.gmra.mxu1 %vm346_vm8, %v2187_v61  ;;  %3361 = vmatprep.subr.mxu1 %v4131_v10 }
0x1150   :  { %3362 = vmatpush3.msra.mxu1 %v4131_v10  ;;  %3357 = vmatpush3.msra.mxu0 %v4124_v8 }
0x1151   :  { %3363 = vmatprep.subr.mxu1 %v4139_v20  ;;  %3372 = vmatprep.subr.mxu0 %v4076_v32 }
0x1152   :  { %3364 = vmatpush3.msra.mxu1 %v4139_v20 }
0x1153   :  { %3365 = vmatprep.subr.mxu1 %v4147_v18 }
0x1154   :  { %3366 = vmatpush3.msra.mxu1 %v4147_v18 }
0x1155   :  { %3367 = vmatprep.subr.mxu1 %v4154_v11 }
0x1156   :  { %3368 = vmatpush3.msra.mxu1 %v4154_v11 }
0x1207   :  { %v3327_v57 = vpop.f32.mrf.mxu1  ;;  %v3338_v19 = vpop.f32.mrf.mxu0 }
0x1208   :  { %v2343_v58 = vadd.f32 %v3327_v57, %v3929_v46 }
0x1209   :  { %v2258_v2 = vpop.f32.mrf.mxu1  ;;  %v2333_v23 = vpop.f32.mrf.mxu0 }
0x120a   :  { %v2899_v10 = vmul.f32 -1.442695, %v2343_v58  ;;  %v2342_v8 = vadd.f32 %v2258_v2, %v3931_v47 }
0x120c   :  { %3513 = vpow2.f32 %v2899_v10  ;;  %v2898_v62 = vmul.f32 -1.442695, %v2342_v8 }
0x120e   :  { %3515 = vpow2.f32 %v2898_v62 }
0x120f   :  { %v3349_v18 = vpop.f32.mrf.mxu1 }
0x1210   :  { %v2450_v11 = vadd.f32 %v4220_v16, %v3349_v18 }
0x1211   :  { %v2444_v5 = vpop.f32.mrf.mxu1 }
0x1212   :  { %v2445_v12 = vadd.f32 %v4220_v16, %v2444_v5 }
0x1219   :  { %v3514_v63 = vpop.eup %3513 }
0x121a   :  { %v2351_v20 = vadd.f32 1.0, %v3514_v63 }
0x121b   :  { %v3516_v1 = vpop.eup %3515 }
0x121c   :  { %3517 = vrcp.f32 %v2351_v20  ;;  %v2350_v3 = vadd.f32 1.0, %v3516_v1 }
0x121e   :  { %3519 = vrcp.f32 %v2350_v3 }
0x1229   :  { %v3518_v7 = vpop.eup %3517 }
0x122a   :  { %v2454_v9 = vmul.f32 %v3518_v7, %v2450_v11 }
0x122b   :  { %v3520_v14 = vpop.eup %3519 }
0x122c   :  { %v2453_v17 = vmul.f32 %v3520_v14, %v2445_v12  ;;  %2459 = vrot.lane.b32.xlu1 %v2454_v9, %s3591_s17 }
0x122e   :  { %2457 = vrot.lane.b32.xlu0 %v2453_v17, %s3591_s17 }
0x1230   :  { %2360 = vrot.lane.b32.xlu1 %v3338_v19, %s3590_s14 }
0x1232   :  { %2358 = vrot.lane.b32.xlu0 %v2333_v23, %s3590_s14 }
0x129e   :  { %v2460_v24 = vpop.permute.xlu1 %2459 }
0x129f   :  { %v2464_v25 = vadd.f32 %v3929_v46, %v2460_v24 }
0x12a0   :  { %v2458_v27 = vpop.permute.xlu0 %2457 }
0x12a1   :  { %3521 = vtanh.f32 %v2464_v25  ;;  %v2463_v38 = vadd.f32 %v2458_v27, %v3931_v47 }
0x12a2   :  { %v2361_v30 = vpop.permute.xlu1 %2360 }
0x12a3   :  { %3523 = vtanh.f32 %v2463_v38  ;;  %v2365_v6 = vadd.f32 %v3929_v46, %v2361_v30 }
0x12a4   :  { %v2359_v34 = vpop.permute.xlu0 %2358 }
0x12a5   :  { %v2364_v37 = vadd.f32 %v2359_v34, %v3931_v47  ;;  %v2901_v42 = vmul.f32 -1.442695, %v2365_v6 }
0x12a7   :  { %v2900_v26 = vmul.f32 -1.442695, %v2364_v37  ;;  %3525 = vpow2.f32 %v2901_v42 }
0x12a9   :  { %3527 = vpow2.f32 %v2900_v26 }
0x12ae   :  { %v3522_v44 = vpop.eup %3521 }
0x12af   :  { %v2468_v28 = vsub.f32 %v4238_v45, %v3522_v44 }
0x12b0   :  { %v3524_v29 = vpop.eup %3523 }
0x12b1   :  { %2473 = vrot.lane.b32.xlu1 %v2468_v28, %s3592_s18  ;;  %v2467_v36 = vsub.f32 %v4240_v15, %v3524_v29 }
0x12b3   :  { %2471 = vrot.lane.b32.xlu0 %v2467_v36, %s3592_s18 }
0x12b4   :  { %v3526_v50 = vpop.eup %3525 }
0x12b5   :  { %v2373_v40 = vadd.f32 1.0, %v3526_v50 }
0x12b6   :  { %v3528_v51 = vpop.eup %3527 }
0x12b7   :  { %v2372_v52 = vadd.f32 1.0, %v3528_v51  ;;  %3529 = vrcp.f32 %v2373_v40 }
0x12b9   :  { %3531 = vrcp.f32 %v2372_v52 }
0x12c4   :  { %v3530_v33 = vpop.eup %3529 }
0x12c6   :  { %v3532_v54 = vpop.eup %3531 }
0x1323   :  { %v2474_v35 = vpop.permute.xlu1 %2473 }
0x1324   :  { %v2478_v53 = vmul.f32 %v3530_v33, %v2474_v35 }
0x1325   :  { %v2472_v55 = vpop.permute.xlu0 %2471 }
0x1326   :  { %v2477_v31 = vmul.f32 %v3532_v54, %v2472_v55  ;;  %2483 = vrot.lane.b32.xlu1 %v2478_v53, %s3590_s14 }
0x1328   :  { %2481 = vrot.lane.b32.xlu0 %v2477_v31, %s3590_s14 }
0x1398   :  { %v2484_v46 = vpop.permute.xlu1 %2483 }
0x1399   :  { %v2488_v47 = vadd.f32 %v3522_v44, %v2484_v46 }
0x139a   :  { %v2482_v39 = vpop.permute.xlu0 %2481 }
0x139b   :  { %v2487_v41 = vadd.f32 %v3524_v29, %v2482_v39  ;;  %2493 = vrot.lane.b32.xlu1 %v2488_v47, %s3591_s17 }
0x139d   :  { %2491 = vrot.lane.b32.xlu0 %v2487_v41, %s3591_s17 }
0x140d   :  { %v2494_v22 = vpop.permute.xlu1 %2493 }
0x140f   :  { %v2492_v21 = vpop.permute.xlu0 %2491 }
0x1410   :  { %3358 = vmatprep.mubr.msk.f32.mxu0 %vm346_vm8, %v2492_v21  ;;  %3369 = vmatprep.mubr.msk.f32.mxu1 %vm346_vm8, %v2492_v21 }
0x1411   :  { %3359 = vmatmul.mubr.msk.f32.vlgmr.msra.gmra.mxu0 %vm346_vm8, %v2494_v22  ;;  %3370 = vmatmul.mubr.msk.f32.vlgmr.msra.gmra.mxu1 %vm346_vm8, %v2494_v22 }
0x1412   :  { %3373 = vmatpush3.msra.mxu0 %v4076_v32  ;;  %3380 = vmatprep.mubr.msk.f32.mxu0 %vm346_vm8, %v2492_v21 }
0x1413   :  { %3374 = vmatprep.subr.mxu0 %v4083_v56 }
0x1414   :  { %3375 = vmatpush3.msra.mxu0 %v4083_v56 }
0x1415   :  { %3376 = vmatprep.subr.mxu0 %v4102_v59 }
0x1416   :  { %3377 = vmatpush3.msra.mxu0 %v4102_v59 }
0x1417   :  { %3378 = vmatprep.subr.mxu0 %v4116_v4 }
0x1418   :  { %3379 = vmatpush3.msra.mxu0 %v4116_v4 }
0x1419   :  { %3381 = vmatmul.mubr.msk.f32.vlgmr.msra.gmra.mxu0 %vm346_vm8, %v2494_v22 }
0x14d1   :  { %v3360_v13 = vpop.f32.mrf.mxu0  ;;  %v3371_v20 = vpop.f32.mrf.mxu1 }
0x14d2   :  { %v2650_v43 = vadd.f32 %v3360_v13, %v3933_v48 }
0x14d3   :  { %v2565_v32 = vpop.f32.mrf.mxu0  ;;  %v2640_v1 = vpop.f32.mrf.mxu1 }
0x14d4   :  { %v2909_v45 = vmul.f32 -1.442695, %v2650_v43  ;;  %v2649_v60 = vadd.f32 %v2565_v32, %v3935_v49 }
0x14d6   :  { %3533 = vpow2.f32 %v2909_v45  ;;  %v2908_v15 = vmul.f32 -1.442695, %v2649_v60 }
0x14d8   :  { %3535 = vpow2.f32 %v2908_v15 }
0x14d9   :  { %v3382_v57 = vpop.f32.mrf.mxu0 }
0x14da   :  { %v2757_v58 = vadd.f32 %v4220_v16, %v3382_v57 }
0x14db   :  { %v2751_v4 = vpop.f32.mrf.mxu0 }
0x14dc   :  { %v2752_v8 = vadd.f32 %v4220_v16, %v2751_v4 }
0x14e3   :  { %v3534_v56 = vpop.eup %3533 }
0x14e4   :  { %v2658_v0 = vadd.f32 1.0, %v3534_v56 }
0x14e5   :  { %v3536_v61 = vpop.eup %3535 }
0x14e6   :  { %3537 = vrcp.f32 %v2658_v0  ;;  %v2657_v59 = vadd.f32 1.0, %v3536_v61 }
0x14e8   :  { %3539 = vrcp.f32 %v2657_v59 }
0x14f3   :  { %v3538_v2 = vpop.eup %3537 }
0x14f4   :  { %v2761_v10 = vmul.f32 %v3538_v2, %v2757_v58 }
0x14f5   :  { %v3540_v62 = vpop.eup %3539 }
0x14f6   :  { %v2760_v63 = vmul.f32 %v3540_v62, %v2752_v8  ;;  %2766 = vrot.lane.b32.xlu1 %v2761_v10, %s3591_s17 }
0x14f8   :  { %2764 = vrot.lane.b32.xlu0 %v2760_v63, %s3591_s17 }
0x14fa   :  { %2667 = vrot.lane.b32.xlu1 %v3371_v20, %s3590_s14 }
0x14fc   :  { %2665 = vrot.lane.b32.xlu0 %v2640_v1, %s3590_s14 }
0x1568   :  { %v2767_v3 = vpop.permute.xlu1 %2766 }
0x1569   :  { %v2771_v18 = vadd.f32 %v3933_v48, %v2767_v3 }
0x156a   :  { %v2765_v5 = vpop.permute.xlu0 %2764 }
0x156b   :  { %3541 = vtanh.f32 %v2771_v18  ;;  %v2770_v11 = vadd.f32 %v2765_v5, %v3935_v49 }
0x156c   :  { %v2668_v14 = vpop.permute.xlu1 %2667 }
0x156d   :  { %3543 = vtanh.f32 %v2770_v11  ;;  %v2672_v19 = vadd.f32 %v3933_v48, %v2668_v14 }
0x156e   :  { %v2666_v17 = vpop.permute.xlu0 %2665 }
0x156f   :  { %v2671_v23 = vadd.f32 %v2666_v17, %v3935_v49  ;;  %v2911_v24 = vmul.f32 -1.442695, %v2672_v19 }
0x1571   :  { %v2910_v25 = vmul.f32 -1.442695, %v2671_v23  ;;  %3545 = vpow2.f32 %v2911_v24 }
0x1573   :  { %3547 = vpow2.f32 %v2910_v25 }
0x1578   :  { %v3542_v16 = vpop.eup %3541 }
0x1579   :  { %v2775_v7 = vsub.f32 %v2488_v47, %v3542_v16 }
0x157a   :  { %v3544_v9 = vpop.eup %3543 }
0x157b   :  { %2780 = vrot.lane.b32.xlu1 %v2775_v7, %s3592_s18  ;;  %v2774_v12 = vsub.f32 %v2487_v41, %v3544_v9 }
0x157d   :  { %2778 = vrot.lane.b32.xlu0 %v2774_v12, %s3592_s18  ;;  %s2811_s18 = sshll.u32 %s3593_s5, 4  ;;  %s2812_s18 = int_to_ptr.vmem [resolvable:$true] %s2811_s18 }
0x157e   :  { %v3546_v27 = vpop.eup %3545  ;;  %s3566_s0 = scalar_lea.vmem %s2812_s18, 256  ;;  %p3571_p1 = scmp.lt.s32.totalorder %s2812_s18, %s2812_s18 }
0x157f   :  { %v2680_v44 = vadd.f32 1.0, %v3546_v27  ;;  %p3567_p0 = scmp.ne.s32.totalorder %s2812_s18, %s3566_s0  ;;  %p3572_p2 = scmp.lt.s32.totalorder %s3566_s0, %s3566_s0 }
0x1580   :  { %v3548_v38 = vpop.eup %3547 }
0x1581   :  { %v2679_v28 = vadd.f32 1.0, %v3548_v38  ;;  %3549 = vrcp.f32 %v2680_v44  ;;  %p3573_p3 = por %p3572_p2, %p3571_p1 }
0x1583   :  { %3551 = vrcp.f32 %v2679_v28  ;;  %p3574_p4 = pnand %p3573_p3, %p3567_p0 }
0x158e   :  { %v3550_v29 = vpop.eup %3549 }
0x1590   :  { %v3552_v34 = vpop.eup %3551 }
0x15ed   :  { %v2781_v36 = vpop.permute.xlu1 %2780 }
0x15ee   :  { %v2785_v30 = vmul.f32 %v3550_v29, %v2781_v36 }
0x15ef   :  { %v2779_v6 = vpop.permute.xlu0 %2778 }
0x15f0   :  { %v2784_v37 = vmul.f32 %v3552_v34, %v2779_v6  ;;  %2790 = vrot.lane.b32.xlu1 %v2785_v30, %s3590_s14 }
0x15f2   :  { %2788 = vrot.lane.b32.xlu0 %v2784_v37, %s3590_s14 }
0x1662   :  { %v2791_v48 = vpop.permute.xlu1 %2790 }
0x1663   :  { %v2795_v49 = vadd.f32 %v3542_v16, %v2791_v48 }
0x1664   :  { %v2789_v42 = vpop.permute.xlu0 %2788 }
0x1665   :  { %v2794_v26 = vadd.f32 %v3544_v9, %v2789_v42  ;;  %2800 = vrot.lane.b32.xlu1 %v2795_v49, %s3591_s17 }
0x1667   :  { %2798 = vrot.lane.b32.xlu0 %v2794_v26, %s3591_s17 }
0x16d7   :  { %v2801_v50 = vpop.permute.xlu1 %2800 }
0x16d8   :  { %2805 = vst.msk [vmem:[#allocation2 + $0x8] sm:$0xff] %vm346_vm8, %v2801_v50 }
0x16d9   :  { %v2799_v51 = vpop.permute.xlu0 %2798 }
0x16da   :  { %2804 = vst.msk [vmem:[#allocation2] sm:$0xff] %vm346_vm8, %v2799_v51 }
0x16db   :  { %3577 = shalt.err (!%p3574_p4)
}
0x16dc   :  { %s3594_s14 = smov 128   ;;  %s3595_s25 = smov 8  }
0x16dd   :  { %2817 = dma.vmem_to_hbm [thread:$0]  %s2812_s18, 256, %s4337_s6, [#allocation3], %s3594_s14, %s3594_s14, %s3595_s25  }
0x16de   :  { %3586 = dma.done.wait [#allocation3], 256  }
0x16df   :  { %3587 = vsyncadd [#allocation3], 4294967040 }
0x16e0   :  { %2821 = vsyncpa [#allocation3], 1 }

</bundles_post_ra>
